<compile_context>
chip_gen: v7x
topology: tpu7x:2x2x1
jax: 0.10.0
libtpu: 0.0.40
codegen_flags: <defaults>
</compile_context>

<pallas_src>
import functools

import numpy as np
import jax
import jax.numpy as jnp
from jax import lax
from jax.experimental import pallas as pl
from jax.experimental.pallas import tpu as pltpu


# ---------------------------------------------------------------------------
# Small helpers: channel rounding + VMEM budgeting
# ---------------------------------------------------------------------------
_TILE_VMEM_BUDGET = 8 * 1024 * 1024        # target per-tile working set (bytes)


def _ru(x, m):
    return ((x + m - 1) // m) * m


def _round_channels(c):
    # Keep channel dims sublane-aligned (x8); once they reach a full vreg row keep
    # them lane-aligned (x128).  DLA's production channel counts (16..512) are already
    # aligned, so this is a no-op there; padding tiny test channels all the way to 128
    # would only inflate HBM traffic for a memory-bound block.
    if c >= 128:
        return _ru(c, 128)
    return max(8, _ru(c, 8))


def _tile_vmem_bytes(TH, s, Wo, cinp, coutp, project, emit_down, cbytes):
    """Rough VMEM working-set estimate for one (batch, row-tile) kernel invocation."""
    Rb = TH + 2 + 2 // s
    Cb = Wo + 2 + 2 // s
    Re = (TH + 2) * (Wo + 2)
    R2 = TH * Wo

    def vmem(rows, lanes, nbytes):          # (8,128)-tiled footprint of a 2-D slab
        return _ru(rows, 8) * _ru(lanes, 128) * nbytes

    b = 0
    b += 2 * s * s * Rb * vmem(Cb, cinp, cbytes)          # haloed input tile (x2 pipeline)
    b += 2 * vmem(R2, coutp, cbytes)                      # output tile (x2 pipeline)
    if emit_down:
        b += 2 * vmem(R2, cinp, cbytes)
    b += vmem(9 * cinp, coutp, cbytes) + vmem(9 * coutp, coutp, cbytes)
    b += 3 * vmem(1, coutp, 4)
    if project:
        b += vmem(cinp, coutp, cbytes)
    # in-kernel temporaries (tap matrices, f32 partials, masked h1, identity)
    b += vmem(Re, 9 * cinp, cbytes) + vmem(Re, coutp, 4)
    b += (TH + 2) * vmem(Wo + 2, coutp, cbytes)
    b += vmem(R2, 9 * coutp, cbytes) + 2 * vmem(R2, coutp, 4)
    b += vmem(R2, cinp, cbytes)
    return b


def _choose_tile_rows(Ho, Wo, s, cinp, coutp, project, emit_down, cbytes):
    """Largest divisor of Ho whose working set fits the per-tile VMEM budget."""
    best = 1
    for th in range(1, Ho + 1):
        if Ho % th == 0 and _tile_vmem_bytes(th, s, Wo, cinp, coutp, project,
                                             emit_down, cbytes) <= _TILE_VMEM_BUDGET:
            best = th
    return best


# ---------------------------------------------------------------------------
# Fused DLAResBlock kernel
# ---------------------------------------------------------------------------
def _make_block_kernel(s, TH, Ho, Wo, cinp, coutp, project, emit_down):
    Re = (TH + 2) * (Wo + 2)     # rows of the extended conv1 output (incl. conv2 halo)
    R2 = TH * Wo                 # rows of this tile's final output

    def kernel(*refs):
        xt_ref, w1_ref, b1_ref, w2_ref, b2_ref = refs[:5]
        pos = 5
        if project:
            wp_ref, bp_ref = refs[pos], refs[pos + 1]
            pos += 2
        out_ref = refs[pos]
        down_ref = refs[pos + 1] if emit_down else None

        cdt = w1_ref.dtype

        # Stride-phase planes of the haloed input tile, loaded from VMEM once.
        planes = [xt_ref[0, k] for k in range(s * s)]       # each (Rb, Cb, Cin)

        # ---- body.conv1: 3x3 / stride-s as ONE (Re, 9*Cin) @ (9*Cin, Cout) matmul,
        # evaluated on a (TH+2, Wo+2) extended window so conv2's halo is recomputed
        # locally instead of round-tripping h1 through HBM.
        taps1 = []
        for kh in range(3):
            for kw in range(3):
                p = planes[(kh % s) * s + (kw % s)]
                taps1.append(p[kh // s: kh // s + TH + 2,
                               kw // s: kw // s + Wo + 2, :])
        a1 = jnp.concatenate(taps1, axis=-1).reshape(Re, 9 * cinp)
        h1 = jnp.dot(a1, w1_ref[...], preferred_element_type=jnp.float32)
        h1 = jnp.maximum(h1 + b1_ref[...], 0.0)             # folded-BN bias + ReLU
        h1 = h1.reshape(TH + 2, Wo + 2, coutp)

        # Zero the extended rows/cols outside the real h1 extent (= conv2 zero padding).
        r0 = pl.program_id(1) * TH
        rows = lax.broadcasted_iota(jnp.int32, (TH + 2, Wo + 2, 1), 0) + (r0 - 1)
        cols = lax.broadcasted_iota(jnp.int32, (TH + 2, Wo + 2, 1), 1) - 1
        inside = (rows >= 0) & (rows < Ho) & (cols >= 0) & (cols < Wo)
        h1 = jnp.where(inside, h1, 0.0).astype(cdt)

        # ---- identity path: MaxPool(k=s, s=s) fused with the optional 1x1 projection.
        pooled = None
        for a in range(s):
            for b in range(s):
                p = planes[((s + 1 + a) % s) * s + ((s + 1 + b) % s)]
                v = p[(s + 1 + a) // s: (s + 1 + a) // s + TH,
                      (s + 1 + b) // s: (s + 1 + b) // s + Wo, :]
                pooled = v if pooled is None else jnp.maximum(pooled, v)
        down = pooled.reshape(R2, cinp)
        if project:
            ident = jnp.dot(down, wp_ref[...],
                            preferred_element_type=jnp.float32) + bp_ref[...]
        else:
            ident = down.astype(jnp.float32)

        # ---- body.conv2: 3x3 / stride-1 + folded BN + residual + final ReLU.
        taps2 = []
        for kh in range(3):
            for kw in range(3):
                taps2.append(h1[kh: kh + TH, kw: kw + Wo, :])
        a2 = jnp.concatenate(taps2, axis=-1).reshape(R2, 9 * coutp)
        y = jnp.dot(a2, w2_ref[...], preferred_element_type=jnp.float32)
        y = jnp.maximum(y + b2_ref[...] + ident, 0.0)

        out_ref[0] = y.astype(out_ref.dtype)
        if emit_down:
            down_ref[0] = down.astype(down_ref.dtype)

    return kernel


# ---------------------------------------------------------------------------
# JAX glue: padding + stride-phase split (pure indexing, no FLOPs, no 9x im2col)
# ---------------------------------------------------------------------------
def _build_phase_tiles(x_nhwc, s, TH, Ho, Wo):
    """Returns (N*n_tiles, s*s, Rb, Cb, C): per-(batch, row-tile) haloed blocks where
    element [.., pr*s+pc, rb, cb, c] = padded_x[row=s*rb+pr, col=s*cb+pc] of the slab.
    Only a single rearranged copy of the input is written to HBM (plus a few halo
    rows per tile) -- no 9x tap expansion."""
    N, H, W, C = x_nhwc.shape
    Rb = TH + 2 + 2 // s
    Cb = Wo + 2 + 2 // s
    nt = Ho // TH
    top = left = s + 1
    bottom = s * (Ho - TH) + s * Rb - top - H
    right = s * Cb - left - W
    xp = jnp.pad(x_nhwc, ((0, 0), (top, bottom), (left, right), (0, 0)))
    slabs = []
    for t in range(nt):
        r0 = s * TH * t
        sl = lax.slice_in_dim(xp, r0, r0 + s * Rb, axis=1)          # (N, s*Rb, s*Cb, C)
        sl = sl.reshape(N, Rb, s, Cb, s, C).transpose(0, 2, 4, 1, 3, 5)
        slabs.append(sl.reshape(N, s * s, Rb, Cb, C))
    xt = jnp.stack(slabs, axis=1)                                   # (N, nt, s*s, Rb, Cb, C)
    return xt.reshape(N * nt, s * s, Rb, Cb, C)


def _fold_and_pad_params(params, cin, cout, cinp, coutp, cdt):
    """Fold eval-mode BN scale into the conv weights, zero-pad channels, cast."""
    dci, dco = cinp - cin, coutp - cout

    def pad_bias(v):
        return jnp.pad(v, ((0, 0), (0, dco))).astype(jnp.float32)

    w1 = params["w1"] * params["scale1"].reshape(1, 1, 1, cout)
    w1 = jnp.pad(w1, ((0, 0), (0, 0), (0, dci), (0, dco)))
    w1 = w1.reshape(9 * cinp, coutp).astype(cdt)

    w2 = params["w2"] * params["scale2"].reshape(1, 1, 1, cout)
    w2 = jnp.pad(w2, ((0, 0), (0, 0), (0, dco), (0, dco)))
    w2 = w2.reshape(9 * coutp, coutp).astype(cdt)

    wp = params["wp"] * params["scalep"].reshape(1, cout)
    wp = jnp.pad(wp, ((0, dci), (0, dco))).astype(cdt)

    return w1, pad_bias(params["bias1"]), w2, pad_bias(params["bias2"]), \
        wp, pad_bias(params["biasp"])


# ---------------------------------------------------------------------------
# DLAResBlock forward (Pallas)
# ---------------------------------------------------------------------------
def dla_res_block_pallas(x_nchw, params, stride, return_down=False,
                         compute_dtype=jnp.bfloat16, tile_rows=None):
    s = int(stride)
    x = jnp.transpose(x_nchw, (0, 2, 3, 1))             # NCHW -> NHWC, channels on lanes
    N, H, W, Cin = x.shape
    Cout = params["w1"].shape[-1]
    if s > 1:
        # TODO(synk): PyTorch MaxPool2d floors non-divisible spatial sizes; only the
        # divisible case (the one DLA actually uses) is supported here.
        assert H % s == 0 and W % s == 0, "spatial dims must be divisible by stride"
    Ho, Wo = (H - 1) // s + 1, (W - 1) // s + 1
    project = Cin != Cout

    cdt = jnp.dtype(compute_dtype)
    cinp, coutp = _round_channels(Cin), _round_channels(Cout)

    if tile_rows is None:
        TH = _choose_tile_rows(Ho, Wo, s, cinp, coutp, project, return_down,
                               cdt.itemsize)
    else:
        TH = int(tile_rows)
    assert Ho % TH == 0, "tile_rows must divide the output height"
    nt = Ho // TH
    Rb = TH + 2 + 2 // s
    Cb = Wo + 2 + 2 // s
    Re = (TH + 2) * (Wo + 2)
    R2 = TH * Wo

    # glue: cast + channel pad + haloed stride-phase tiles (indexing only)
    xc = x.astype(cdt)
    if cinp != Cin:
        xc = jnp.pad(xc, ((0, 0), (0, 0), (0, 0), (0, cinp - Cin)))
    x_tiles = _build_phase_tiles(xc, s, TH, Ho, Wo)     # (N*nt, s*s, Rb, Cb, cinp)

    w1, b1, w2, b2, wp, bp = _fold_and_pad_params(params, Cin, Cout, cinp, coutp, cdt)

    kernel = _make_block_kernel(s, TH, Ho, Wo, cinp, coutp, project, return_down)

    const2 = lambda n, t: (0, 0)                        # weights/biases stay resident
    in_specs = [
        pl.BlockSpec((1, s * s, Rb, Cb, cinp),
                     lambda n, t: (n * nt + t, 0, 0, 0, 0)),
        pl.BlockSpec((9 * cinp, coutp), const2),
        pl.BlockSpec((1, coutp), const2),
        pl.BlockSpec((9 * coutp, coutp), const2),
        pl.BlockSpec((1, coutp), const2),
    ]
    args = [x_tiles, w1, b1, w2, b2]
    if project:
        in_specs += [pl.BlockSpec((cinp, coutp), const2),
                     pl.BlockSpec((1, coutp), const2)]
        args += [wp, bp]

    out_map = lambda n, t: (n * nt + t, 0, 0)
    out_shape = [jax.ShapeDtypeStruct((N * nt, R2, coutp), cdt)]
    out_specs = [pl.BlockSpec((1, R2, coutp), out_map)]
    if return_down:
        out_shape.append(jax.ShapeDtypeStruct((N * nt, R2, cinp), cdt))
        out_specs.append(pl.BlockSpec((1, R2, cinp), out_map))

    est = _tile_vmem_bytes(TH, s, Wo, cinp, coutp, project, return_down, cdt.itemsize)
    vmem_limit = int(min(64 * 2 ** 20, max(8 * 2 ** 20, 2 * est)))
    flops = 2 * N * nt * (Re * 9 * cinp * coutp + R2 * 9 * coutp * coutp
                          + (R2 * cinp * coutp if project else 0))
    bytes_accessed = (int(np.prod(x_tiles.shape)) * cdt.itemsize
                      + (9 * cinp + 9 * coutp + (cinp if project else 0)) * coutp * cdt.itemsize
                      + 3 * coutp * 4
                      + sum(int(np.prod(o.shape)) * cdt.itemsize for o in out_shape))

    outs = pl.pallas_call(
        kernel,
        grid=(N, nt),
        in_specs=in_specs,
        out_specs=tuple(out_specs) if return_down else out_specs[0],
        out_shape=tuple(out_shape) if return_down else out_shape[0],
        compiler_params=pltpu.CompilerParams(
            dimension_semantics=("parallel", "parallel"),
            vmem_limit_bytes=vmem_limit),
        cost_estimate=pl.CostEstimate(flops=int(flops), transcendentals=0,
                                      bytes_accessed=int(bytes_accessed)),
    )(*args)

    out_flat = outs[0] if return_down else outs
    out = out_flat.reshape(N, Ho, Wo, coutp)[..., :Cout]
    out = jnp.transpose(out, (0, 3, 1, 2)).astype(x_nchw.dtype)
    if not return_down:
        return out
    down = outs[1].reshape(N, Ho, Wo, cinp)[..., :Cin]
    down = jnp.transpose(down, (0, 3, 1, 2)).astype(x_nchw.dtype)
    return out, down


# ---------------------------------------------------------------------------
# Parameters (deterministic synthetic init; BN folded in eval mode)
# ---------------------------------------------------------------------------
def init_params(key, cin, cout):
    keys = jax.random.split(key, 6)

    def conv_w(k, shape, fan_in):
        return jax.random.normal(k, shape, jnp.float32) / np.sqrt(fan_in)

    def bn_fold(k, c):
        k1, k2, k3, k4 = jax.random.split(k, 4)
        gamma = 1.0 + 0.1 * jax.random.normal(k1, (c,), jnp.float32)
        beta = 0.1 * jax.random.normal(k2, (c,), jnp.float32)
        mean = 0.1 * jax.random.normal(k3, (c,), jnp.float32)
        var = 0.5 + jnp.abs(jax.random.normal(k4, (c,), jnp.float32))
        scale = gamma * lax.rsqrt(var + 1e-5)
        bias = beta - mean * scale
        return scale.reshape(1, c), bias.reshape(1, c)

    w1 = conv_w(keys[0], (3, 3, cin, cout), 9 * cin)      # HWIO
    w2 = conv_w(keys[1], (3, 3, cout, cout), 9 * cout)    # HWIO
    wp = conv_w(keys[2], (cin, cout), cin)                # 1x1 projection
    scale1, bias1 = bn_fold(keys[3], cout)
    scale2, bias2 = bn_fold(keys[4], cout)
    scalep, biasp = bn_fold(keys[5], cout)
    return dict(w1=w1, w2=w2, wp=wp,
                scale1=scale1, bias1=bias1,
                scale2=scale2, bias2=bias2,
                scalep=scalep, biasp=biasp)


# ---------------------------------------------------------------------------
# Pure-JAX reference for verification
# ---------------------------------------------------------------------------
def dla_res_block_reference(x_nchw, params, stride, return_down=False):
    x = jnp.transpose(x_nchw, (0, 2, 3, 1)).astype(jnp.float32)
    cin = x.shape[-1]
    cout = params["w1"].shape[-1]
    s = int(stride)
    dn = ("NHWC", "HWIO", "NHWC")

    down = (lax.reduce_window(x, -jnp.inf, lax.max,
                              (1, s, s, 1), (1, s, s, 1), "VALID")
            if s > 1 else x)

    if cin != cout:
        identity = lax.conv_general_dilated(
            down, params["wp"].reshape(1, 1, cin, cout), (1, 1), "VALID",
            dimension_numbers=dn, precision=lax.Precision.HIGHEST)
        identity = identity * params["scalep"].reshape(1, 1, 1, -1) \
                            + params["biasp"].reshape(1, 1, 1, -1)
    else:
        identity = down

    h = lax.conv_general_dilated(x, params["w1"], (s, s), ((1, 1), (1, 1)),
                                 dimension_numbers=dn,
                                 precision=lax.Precision.HIGHEST)
    h = jnp.maximum(h * params["scale1"].reshape(1, 1, 1, -1)
                    + params["bias1"].reshape(1, 1, 1, -1), 0.0)
    h = lax.conv_general_dilated(h, params["w2"], (1, 1), ((1, 1), (1, 1)),
                                 dimension_numbers=dn,
                                 precision=lax.Precision.HIGHEST)
    h = h * params["scale2"].reshape(1, 1, 1, -1) \
          + params["bias2"].reshape(1, 1, 1, -1)
    out = jnp.transpose(jnp.maximum(h + identity, 0.0), (0, 3, 1, 2))
    if return_down:
        return out, jnp.transpose(down, (0, 3, 1, 2))
    return out


# ---------------------------------------------------------------------------
if __name__ == "__main__":
    key = jax.random.PRNGKey(0)
    cases = [
        # (name,               N, Cin, Cout,  H,  W, stride, compute_dtype, tile_rows, tol)
        ("s2-project-f32-tiled", 2, 4, 8, 16, 16, 2, jnp.float32, 4, 5e-2),
        ("s2-project-bf16",      2, 4, 8, 16, 16, 2, jnp.bfloat16, None, 1e-1),
        ("s1-identity-bf16",     2, 8, 8, 16, 16, 1, jnp.bfloat16, 4, 1e-1),
    ]
    for name, N, Cin, Cout, H, W, stride, cdt, tr, tol in cases:
        key, kx, kp = jax.random.split(key, 3)
        x = jax.random.normal(kx, (N, Cin, H, W), jnp.float32)
        params = init_params(kp, Cin, Cout)

        fwd = jax.jit(functools.partial(dla_res_block_pallas, stride=stride,
                                        return_down=True, compute_dtype=cdt,
                                        tile_rows=tr))
        out, down = jax.block_until_ready(fwd(x, params))
        assert out.shape == (N, Cout, H // stride, W // stride), (name, out.shape)

        ref_out, ref_down = dla_res_block_reference(x, params, stride, return_down=True)
        np.testing.assert_allclose(np.asarray(out.astype(jnp.float32)),
                                   np.asarray(ref_out), atol=tol, rtol=tol,
                                   err_msg=name)
        np.testing.assert_allclose(np.asarray(down.astype(jnp.float32)),
                                   np.asarray(ref_down), atol=tol, rtol=tol,
                                   err_msg=name + "-down")

    print("KERNEL_OK")
</pallas_src>

<mosaic_0001>
module attributes {stable_mosaic.version = 11 : i64} {
  func.func @kernel(%arg0: i32, %arg1: i32, %arg2: memref<1x4x7x11x8xf32, #tpu.memory_space<vmem>>, %arg3: memref<72x8xf32, #tpu.memory_space<vmem>>, %arg4: memref<1x8xf32, #tpu.memory_space<vmem>>, %arg5: memref<72x8xf32, #tpu.memory_space<vmem>>, %arg6: memref<1x8xf32, #tpu.memory_space<vmem>>, %arg7: memref<8x8xf32, #tpu.memory_space<vmem>>, %arg8: memref<1x8xf32, #tpu.memory_space<vmem>>, %arg9: memref<1x32x8xf32, #tpu.memory_space<vmem>>, %arg10: memref<1x32x8xf32, #tpu.memory_space<vmem>>) attributes {dimension_semantics = [#tpu.dimension_semantics<parallel>, #tpu.dimension_semantics<parallel>], iteration_bounds = array<i64: 2, 2>, scalar_prefetch = 0 : i64, scratch_operands = 0 : i64, tpu.core_type = #tpu.core_type<tc>, window_params = [{transform_indices = @transform_0, window_bounds = array<i64: 1, 4, 7, 11, 8>}, {pipeline_mode = #tpu.pipeline_mode<synchronous>, transform_indices = @transform_1, window_bounds = array<i64: 72, 8>}, {pipeline_mode = #tpu.pipeline_mode<synchronous>, transform_indices = @transform_2, window_bounds = array<i64: 1, 8>}, {pipeline_mode = #tpu.pipeline_mode<synchronous>, transform_indices = @transform_3, window_bounds = array<i64: 72, 8>}, {pipeline_mode = #tpu.pipeline_mode<synchronous>, transform_indices = @transform_4, window_bounds = array<i64: 1, 8>}, {pipeline_mode = #tpu.pipeline_mode<synchronous>, transform_indices = @transform_5, window_bounds = array<i64: 8, 8>}, {pipeline_mode = #tpu.pipeline_mode<synchronous>, transform_indices = @transform_6, window_bounds = array<i64: 1, 8>}, {transform_indices = @transform_7, window_bounds = array<i64: 1, 32, 8>}, {transform_indices = @transform_8, window_bounds = array<i64: 1, 32, 8>}]} {
    %c0 = arith.constant 0 : index
    %c0_0 = arith.constant 0 : index
    %c0_1 = arith.constant 0 : index
    %c0_2 = arith.constant 0 : index
    %c0_3 = arith.constant 0 : index
    %0 = vector.load %arg2[%c0, %c0_0, %c0_1, %c0_2, %c0_3] : memref<1x4x7x11x8xf32, #tpu.memory_space<vmem>>, vector<1x1x7x11x8xf32>
    %1 = vector.shape_cast %0 : vector<1x1x7x11x8xf32> to vector<7x11x8xf32>
    %c0_4 = arith.constant 0 : index
    %c1 = arith.constant 1 : index
    %c0_5 = arith.constant 0 : index
    %c0_6 = arith.constant 0 : index
    %c0_7 = arith.constant 0 : index
    %2 = vector.load %arg2[%c0_4, %c1, %c0_5, %c0_6, %c0_7] : memref<1x4x7x11x8xf32, #tpu.memory_space<vmem>>, vector<1x1x7x11x8xf32>
    %3 = vector.shape_cast %2 : vector<1x1x7x11x8xf32> to vector<7x11x8xf32>
    %c0_8 = arith.constant 0 : index
    %c2 = arith.constant 2 : index
    %c0_9 = arith.constant 0 : index
    %c0_10 = arith.constant 0 : index
    %c0_11 = arith.constant 0 : index
    %4 = vector.load %arg2[%c0_8, %c2, %c0_9, %c0_10, %c0_11] : memref<1x4x7x11x8xf32, #tpu.memory_space<vmem>>, vector<1x1x7x11x8xf32>
    %5 = vector.shape_cast %4 : vector<1x1x7x11x8xf32> to vector<7x11x8xf32>
    %c0_12 = arith.constant 0 : index
    %c3 = arith.constant 3 : index
    %c0_13 = arith.constant 0 : index
    %c0_14 = arith.constant 0 : index
    %c0_15 = arith.constant 0 : index
    %6 = vector.load %arg2[%c0_12, %c3, %c0_13, %c0_14, %c0_15] : memref<1x4x7x11x8xf32, #tpu.memory_space<vmem>>, vector<1x1x7x11x8xf32>
    %7 = vector.shape_cast %6 : vector<1x1x7x11x8xf32> to vector<7x11x8xf32>
    %8 = vector.extract_strided_slice %1 {offsets = [0, 0, 0], sizes = [6, 10, 8], strides = [1, 1, 1]} : vector<7x11x8xf32> to vector<6x10x8xf32>
    %9 = vector.extract_strided_slice %3 {offsets = [0, 0, 0], sizes = [6, 10, 8], strides = [1, 1, 1]} : vector<7x11x8xf32> to vector<6x10x8xf32>
    %10 = vector.extract_strided_slice %1 {offsets = [0, 1, 0], sizes = [6, 10, 8], strides = [1, 1, 1]} : vector<7x11x8xf32> to vector<6x10x8xf32>
    %11 = vector.extract_strided_slice %5 {offsets = [0, 0, 0], sizes = [6, 10, 8], strides = [1, 1, 1]} : vector<7x11x8xf32> to vector<6x10x8xf32>
    %12 = vector.extract_strided_slice %7 {offsets = [0, 0, 0], sizes = [6, 10, 8], strides = [1, 1, 1]} : vector<7x11x8xf32> to vector<6x10x8xf32>
    %13 = vector.extract_strided_slice %5 {offsets = [0, 1, 0], sizes = [6, 10, 8], strides = [1, 1, 1]} : vector<7x11x8xf32> to vector<6x10x8xf32>
    %14 = vector.extract_strided_slice %1 {offsets = [1, 0, 0], sizes = [6, 10, 8], strides = [1, 1, 1]} : vector<7x11x8xf32> to vector<6x10x8xf32>
    %15 = vector.extract_strided_slice %3 {offsets = [1, 0, 0], sizes = [6, 10, 8], strides = [1, 1, 1]} : vector<7x11x8xf32> to vector<6x10x8xf32>
    %16 = vector.extract_strided_slice %1 {offsets = [1, 1, 0], sizes = [6, 10, 8], strides = [1, 1, 1]} : vector<7x11x8xf32> to vector<6x10x8xf32>
    %17 = tpu.concatenate %8, %9, %10, %11, %12, %13, %14, %15, %16 in 2 : vector<6x10x8xf32>, vector<6x10x8xf32>, vector<6x10x8xf32>, vector<6x10x8xf32>, vector<6x10x8xf32>, vector<6x10x8xf32>, vector<6x10x8xf32>, vector<6x10x8xf32>, vector<6x10x8xf32> -> vector<6x10x72xf32>
    %18 = vector.shape_cast %17 : vector<6x10x72xf32> to vector<60x72xf32>
    %c0_16 = arith.constant 0 : index
    %c0_17 = arith.constant 0 : index
    %19 = vector.load %arg3[%c0_16, %c0_17] : memref<72x8xf32, #tpu.memory_space<vmem>>, vector<72x8xf32>
    %cst = arith.constant dense<0.000000e+00> : vector<60x8xf32>
    %20 = tpu.matmul %18, %19, %cst {dimension_numbers = #tpu.dot_dimension_numbers<[1], [0], [0], [1], [0, 0, 1, 1], [], []>} : vector<60x72xf32>, vector<72x8xf32>, vector<60x8xf32> -> vector<60x8xf32>
    %c0_18 = arith.constant 0 : index
    %c0_19 = arith.constant 0 : index
    %21 = vector.load %arg4[%c0_18, %c0_19] : memref<1x8xf32, #tpu.memory_space<vmem>>, vector<1x8xf32>
    %22 = vector.broadcast %21 : vector<1x8xf32> to vector<60x8xf32>
    %23 = arith.addf %20, %22 : vector<60x8xf32>
    %cst_20 = arith.constant 0.000000e+00 : f32
    %24 = vector.broadcast %cst_20 : f32 to vector<60x8xf32>
    %25 = arith.maximumf %23, %24 : vector<60x8xf32>
    %26 = vector.shape_cast %25 : vector<60x8xf32> to vector<6x10x8xf32>
    %c4_i32 = arith.constant 4 : i32
    %27 = arith.muli %arg1, %c4_i32 : i32
    %28 = tpu.iota {dimensions = array<i32: 0>} : vector<6x10x1xi32>
    %c1_i32 = arith.constant 1 : i32
    %29 = arith.subi %27, %c1_i32 : i32
    %30 = vector.broadcast %29 : i32 to vector<6x10x1xi32>
    %31 = arith.addi %28, %30 : vector<6x10x1xi32>
    %32 = tpu.iota {dimensions = array<i32: 1>} : vector<6x10x1xi32>
    %c1_i32_21 = arith.constant 1 : i32
    %33 = vector.broadcast %c1_i32_21 : i32 to vector<6x10x1xi32>
    %34 = arith.subi %32, %33 : vector<6x10x1xi32>
    %c0_i32 = arith.constant 0 : i32
    %35 = vector.broadcast %c0_i32 : i32 to vector<6x10x1xi32>
    %36 = arith.cmpi sge, %31, %35 : vector<6x10x1xi32>
    %c8_i32 = arith.constant 8 : i32
    %37 = vector.broadcast %c8_i32 : i32 to vector<6x10x1xi32>
    %38 = arith.cmpi slt, %31, %37 : vector<6x10x1xi32>
    %39 = arith.andi %36, %38 : vector<6x10x1xi1>
    %c0_i32_22 = arith.constant 0 : i32
    %40 = vector.broadcast %c0_i32_22 : i32 to vector<6x10x1xi32>
    %41 = arith.cmpi sge, %34, %40 : vector<6x10x1xi32>
    %42 = arith.andi %39, %41 : vector<6x10x1xi1>
    %c8_i32_23 = arith.constant 8 : i32
    %43 = vector.broadcast %c8_i32_23 : i32 to vector<6x10x1xi32>
    %44 = arith.cmpi slt, %34, %43 : vector<6x10x1xi32>
    %45 = arith.andi %42, %44 : vector<6x10x1xi1>
    %cst_24 = arith.constant 0.000000e+00 : f32
    %46 = vector.shape_cast %45 : vector<6x10x1xi1> to vector<6x10x1xi1>
    %47 = vector.broadcast %46 : vector<6x10x1xi1> to vector<6x10x8xi1>
    %48 = vector.broadcast %cst_24 : f32 to vector<6x10x8xf32>
    %49 = arith.select %47, %26, %48 : vector<6x10x8xi1>, vector<6x10x8xf32>
    %50 = vector.extract_strided_slice %7 {offsets = [1, 1, 0], sizes = [4, 8, 8], strides = [1, 1, 1]} : vector<7x11x8xf32> to vector<4x8x8xf32>
    %51 = vector.extract_strided_slice %5 {offsets = [1, 2, 0], sizes = [4, 8, 8], strides = [1, 1, 1]} : vector<7x11x8xf32> to vector<4x8x8xf32>
    %52 = arith.maximumf %50, %51 : vector<4x8x8xf32>
    %53 = vector.extract_strided_slice %3 {offsets = [2, 1, 0], sizes = [4, 8, 8], strides = [1, 1, 1]} : vector<7x11x8xf32> to vector<4x8x8xf32>
    %54 = arith.maximumf %52, %53 : vector<4x8x8xf32>
    %55 = vector.extract_strided_slice %1 {offsets = [2, 2, 0], sizes = [4, 8, 8], strides = [1, 1, 1]} : vector<7x11x8xf32> to vector<4x8x8xf32>
    %56 = arith.maximumf %54, %55 : vector<4x8x8xf32>
    %57 = vector.shape_cast %56 : vector<4x8x8xf32> to vector<32x8xf32>
    %c0_25 = arith.constant 0 : index
    %c0_26 = arith.constant 0 : index
    %58 = vector.load %arg7[%c0_25, %c0_26] : memref<8x8xf32, #tpu.memory_space<vmem>>, vector<8x8xf32>
    %cst_27 = arith.constant dense<0.000000e+00> : vector<32x8xf32>
    %59 = tpu.matmul %57, %58, %cst_27 {dimension_numbers = #tpu.dot_dimension_numbers<[1], [0], [0], [1], [0, 0, 1, 1], [], []>} : vector<32x8xf32>, vector<8x8xf32>, vector<32x8xf32> -> vector<32x8xf32>
    %c0_28 = arith.constant 0 : index
    %c0_29 = arith.constant 0 : index
    %60 = vector.load %arg8[%c0_28, %c0_29] : memref<1x8xf32, #tpu.memory_space<vmem>>, vector<1x8xf32>
    %61 = vector.broadcast %60 : vector<1x8xf32> to vector<32x8xf32>
    %62 = arith.addf %59, %61 : vector<32x8xf32>
    %63 = vector.extract_strided_slice %49 {offsets = [0, 0, 0], sizes = [4, 8, 8], strides = [1, 1, 1]} : vector<6x10x8xf32> to vector<4x8x8xf32>
    %64 = vector.extract_strided_slice %49 {offsets = [0, 1, 0], sizes = [4, 8, 8], strides = [1, 1, 1]} : vector<6x10x8xf32> to vector<4x8x8xf32>
    %65 = vector.extract_strided_slice %49 {offsets = [0, 2, 0], sizes = [4, 8, 8], strides = [1, 1, 1]} : vector<6x10x8xf32> to vector<4x8x8xf32>
    %66 = vector.extract_strided_slice %49 {offsets = [1, 0, 0], sizes = [4, 8, 8], strides = [1, 1, 1]} : vector<6x10x8xf32> to vector<4x8x8xf32>
    %67 = vector.extract_strided_slice %49 {offsets = [1, 1, 0], sizes = [4, 8, 8], strides = [1, 1, 1]} : vector<6x10x8xf32> to vector<4x8x8xf32>
    %68 = vector.extract_strided_slice %49 {offsets = [1, 2, 0], sizes = [4, 8, 8], strides = [1, 1, 1]} : vector<6x10x8xf32> to vector<4x8x8xf32>
    %69 = vector.extract_strided_slice %49 {offsets = [2, 0, 0], sizes = [4, 8, 8], strides = [1, 1, 1]} : vector<6x10x8xf32> to vector<4x8x8xf32>
    %70 = vector.extract_strided_slice %49 {offsets = [2, 1, 0], sizes = [4, 8, 8], strides = [1, 1, 1]} : vector<6x10x8xf32> to vector<4x8x8xf32>
    %71 = vector.extract_strided_slice %49 {offsets = [2, 2, 0], sizes = [4, 8, 8], strides = [1, 1, 1]} : vector<6x10x8xf32> to vector<4x8x8xf32>
    %72 = tpu.concatenate %63, %64, %65, %66, %67, %68, %69, %70, %71 in 2 : vector<4x8x8xf32>, vector<4x8x8xf32>, vector<4x8x8xf32>, vector<4x8x8xf32>, vector<4x8x8xf32>, vector<4x8x8xf32>, vector<4x8x8xf32>, vector<4x8x8xf32>, vector<4x8x8xf32> -> vector<4x8x72xf32>
    %73 = vector.shape_cast %72 : vector<4x8x72xf32> to vector<32x72xf32>
    %c0_30 = arith.constant 0 : index
    %c0_31 = arith.constant 0 : index
    %74 = vector.load %arg5[%c0_30, %c0_31] : memref<72x8xf32, #tpu.memory_space<vmem>>, vector<72x8xf32>
    %cst_32 = arith.constant dense<0.000000e+00> : vector<32x8xf32>
    %75 = tpu.matmul %73, %74, %cst_32 {dimension_numbers = #tpu.dot_dimension_numbers<[1], [0], [0], [1], [0, 0, 1, 1], [], []>} : vector<32x72xf32>, vector<72x8xf32>, vector<32x8xf32> -> vector<32x8xf32>
    %c0_33 = arith.constant 0 : index
    %c0_34 = arith.constant 0 : index
    %76 = vector.load %arg6[%c0_33, %c0_34] : memref<1x8xf32, #tpu.memory_space<vmem>>, vector<1x8xf32>
    %77 = vector.broadcast %76 : vector<1x8xf32> to vector<32x8xf32>
    %78 = arith.addf %75, %77 : vector<32x8xf32>
    %79 = arith.addf %78, %62 : vector<32x8xf32>
    %cst_35 = arith.constant 0.000000e+00 : f32
    %80 = vector.broadcast %cst_35 : f32 to vector<32x8xf32>
    %81 = arith.maximumf %79, %80 : vector<32x8xf32>
    %c0_36 = arith.constant 0 : index
    %c0_37 = arith.constant 0 : index
    %c0_38 = arith.constant 0 : index
    %82 = vector.load %arg9[%c0_36, %c0_37, %c0_38] : memref<1x32x8xf32, #tpu.memory_space<vmem>>, vector<1x32x8xf32>
    %83 = vector.shape_cast %82 : vector<1x32x8xf32> to vector<32x8xf32>
    %84 = vector.shape_cast %81 : vector<32x8xf32> to vector<1x32x8xf32>
    tpu.vector_store %arg9[%c0_36, %c0_37, %c0_38], %84 {strides = array<i32>} : memref<1x32x8xf32, #tpu.memory_space<vmem>>, vector<1x32x8xf32>,
    %c0_39 = arith.constant 0 : index
    %c0_40 = arith.constant 0 : index
    %c0_41 = arith.constant 0 : index
    %85 = vector.load %arg10[%c0_39, %c0_40, %c0_41] : memref<1x32x8xf32, #tpu.memory_space<vmem>>, vector<1x32x8xf32>
    %86 = vector.shape_cast %85 : vector<1x32x8xf32> to vector<32x8xf32>
    %87 = vector.shape_cast %57 : vector<32x8xf32> to vector<1x32x8xf32>
    tpu.vector_store %arg10[%c0_39, %c0_40, %c0_41], %87 {strides = array<i32>} : memref<1x32x8xf32, #tpu.memory_space<vmem>>, vector<1x32x8xf32>,
    return
  }
  func.func @transform_0(%arg0: i32, %arg1: i32) -> (i32, i32, i32, i32, i32) {
    %c2_i32 = arith.constant 2 : i32
    %0 = arith.muli %arg0, %c2_i32 : i32
    %1 = arith.addi %0, %arg1 : i32
    %c0_i32 = arith.constant 0 : i32
    %c0_i32_0 = arith.constant 0 : i32
    %c0_i32_1 = arith.constant 0 : i32
    %c0_i32_2 = arith.constant 0 : i32
    %c0_i32_3 = arith.constant 0 : i32
    return %1, %c0_i32, %c0_i32_0, %c0_i32_1, %c0_i32_2 : i32, i32, i32, i32, i32
  }
  func.func @transform_1(%arg0: i32, %arg1: i32) -> (i32, i32) {
    %c0_i32 = arith.constant 0 : i32
    %c0_i32_0 = arith.constant 0 : i32
    %c0_i32_1 = arith.constant 0 : i32
    return %c0_i32, %c0_i32_0 : i32, i32
  }
  func.func @transform_2(%arg0: i32, %arg1: i32) -> (i32, i32) {
    %c0_i32 = arith.constant 0 : i32
    %c0_i32_0 = arith.constant 0 : i32
    %c0_i32_1 = arith.constant 0 : i32
    return %c0_i32, %c0_i32_0 : i32, i32
  }
  func.func @transform_3(%arg0: i32, %arg1: i32) -> (i32, i32) {
    %c0_i32 = arith.constant 0 : i32
    %c0_i32_0 = arith.constant 0 : i32
    %c0_i32_1 = arith.constant 0 : i32
    return %c0_i32, %c0_i32_0 : i32, i32
  }
  func.func @transform_4(%arg0: i32, %arg1: i32) -> (i32, i32) {
    %c0_i32 = arith.constant 0 : i32
    %c0_i32_0 = arith.constant 0 : i32
    %c0_i32_1 = arith.constant 0 : i32
    return %c0_i32, %c0_i32_0 : i32, i32
  }
  func.func @transform_5(%arg0: i32, %arg1: i32) -> (i32, i32) {
    %c0_i32 = arith.constant 0 : i32
    %c0_i32_0 = arith.constant 0 : i32
    %c0_i32_1 = arith.constant 0 : i32
    return %c0_i32, %c0_i32_0 : i32, i32
  }
  func.func @transform_6(%arg0: i32, %arg1: i32) -> (i32, i32) {
    %c0_i32 = arith.constant 0 : i32
    %c0_i32_0 = arith.constant 0 : i32
    %c0_i32_1 = arith.constant 0 : i32
    return %c0_i32, %c0_i32_0 : i32, i32
  }
  func.func @transform_7(%arg0: i32, %arg1: i32) -> (i32, i32, i32) {
    %c2_i32 = arith.constant 2 : i32
    %0 = arith.muli %arg0, %c2_i32 : i32
    %1 = arith.addi %0, %arg1 : i32
    %c0_i32 = arith.constant 0 : i32
    %c0_i32_0 = arith.constant 0 : i32
    %c0_i32_1 = arith.constant 0 : i32
    return %1, %c0_i32, %c0_i32_0 : i32, i32, i32
  }
  func.func @transform_8(%arg0: i32, %arg1: i32) -> (i32, i32, i32) {
    %c2_i32 = arith.constant 2 : i32
    %0 = arith.muli %arg0, %c2_i32 : i32
    %1 = arith.addi %0, %arg1 : i32
    %c0_i32 = arith.constant 0 : i32
    %c0_i32_0 = arith.constant 0 : i32
    %c0_i32_1 = arith.constant 0 : i32
    return %1, %c0_i32, %c0_i32_0 : i32, i32, i32
  }
}

</mosaic_0001>

<bundles_post_ra>
// kernel: dla_res_block_pallas.1
= control target key start
LH: loop header
LB: loop body
LE: loop exit
PB: predicated region body
PF: predicated region fallthrough
CT: control target
= control target key end

     0   :  { %s2674_s27 = smov 0   ;;  %s2676_s28 = smov 0   ;;  %s3741_s0 = inlined_call_operand.vmem [shape: f32[4,4,7,11,8], index: 0, kind: input, shape index: {}]   ;;  %s3742_s1 = inlined_call_operand.vmem [shape: f32[72,8], index: 1, kind: input, shape index: {}]   ;;  %s3743_s2 = inlined_call_operand.vmem [shape: f32[1,8], index: 2, kind: input, shape index: {}]   ;;  %s3744_s3 = inlined_call_operand.vmem [shape: f32[72,8], index: 3, kind: input, shape index: {}]   ;;  %s3745_s4 = inlined_call_operand.vmem [shape: f32[1,8], index: 4, kind: input, shape index: {}]   ;;  %s3746_s5 = inlined_call_operand.vmem [shape: f32[8,8], index: 5, kind: input, shape index: {}]   ;;  %s3747_s6 = inlined_call_operand.vmem [shape: f32[1,8], index: 6, kind: input, shape index: {}]   ;;  %s3748_s7 = inlined_call_operand.vmem [shape: f32[4,32,8], index: 7, kind: output, shape index: {0}]   ;;  %s3749_s8 = inlined_call_operand.vmem [shape: f32[4,32,8], index: 8, kind: output, shape index: {1}]  }
   0x1   :  { %s2678_s29 = smov 0   ;;  %s2680_s30 = smov 0  }
   0x2   :  { %s2682_s9 = smov 0  }
   0x3 LB: > { %s28_s10 = sadd.s32 1, %s2610_s29  ;;  %s31_s11 = sadd.s32 1, %s2614_s30  ;;  %s2618_s9 = sphi %s2682_s9, %s19_s9   ;;  %s2614_s30 = sphi %s2680_s30, %s3832_s30   ;;  %s2610_s29 = sphi %s2678_s29, %s3831_s29   ;;  %s2606_s28 = sphi %s2676_s28, %s3830_s28   ;;  %s2602_s27 = sphi %s2674_s27, %s3829_s27  }
   0x4   : > { %p29_p0 = scmp.ge.s32.totalorder %s28_s10, 2  ;;  %p2312_p1 = scmp.ge.s32.totalorder %s2618_s9, 1 }
   0x5   : > { %p293_p2 = scmp.lt.s32.totalorder %s2618_s9, 5 }
   0x6   : > { %s3834_s10 = smov (%p29_p0, %s28_s10), 0  ;;  %s3836_s11 = smov (!%p29_p0, %s31_s11), %s2614_s30 }
   0x7   : > { %p294_p3 = pnand %p2312_p1, %p293_p2  ;;  %p33_p4 = scmp.ge.s32.totalorder %s3836_s11, 2 }
   0x9   : > { %s3838_s11 = smov (%p33_p4, %s3836_s11), 0  ;;  %297 = sbr.rel (%p294_p3) target bundleno = 921 (0x399), region = 48 }
  0x10   : > { %s2313_s12 = sshll.u32 %s2606_s28, 1  ;;  %s2620_s18 = smov 24   ;;  %vm480_vm0 = vcmask 1046528   ;;  %v1060_v56 = vld [vmem:[%s3742_s1] sm:$0xff]  ;;  %v1061_v57 = vld [vmem:[%s3742_s1 + $0x8] sm:$0xff]  ;;  %v1062_v60 = vld [vmem:[%s3742_s1 + $0x10] sm:$0xff] }
  0x11   : > { %s339_s13 = sadd.s32 %s2602_s27, %s2313_s12  ;;  %s2621_s19 = smov 8   ;;  %v2483_v58 = vpack.c.bf16 %v1061_v57, %v1060_v56  ;;  %v1063_v61 = vld [vmem:[%s3742_s1 + $0x18] sm:$0xff]  ;;  %vm800_vm1 = vcmask 64512   ;;  %vm813_vm2 = vcmask 130048   ;;  %vm826_vm3 = vcmask 195584  }
  0x12   : > { %p340_p5 = scmp.lt.s32.totalorder %s339_s13, 3  ;;  %s2622_s20 = smov 32   ;;  %v2487_v62 = vpack.c.bf16 %v1063_v61, %v1062_v60  ;;  %vm839_vm4 = vcmask 261120   ;;  %vm852_vm5 = vcmask 326656   ;;  %vm865_vm6 = vcmask 392192  }
  0x13   : > { %s2623_s21 = smov 16   ;;  %s2624_s22 = smov 40   ;;  %2484 = vmatprep.subr.bf16.mxu0 %v2483_v58  ;;  %vm3768_vm7 = vcmask 457728   ;;  %vm3767_vm8 = vcmask 523264   ;;  %vm3766_vm9 = vcmask 588800  }
  0x14   : > { %s3840_s13 = smov (!%p340_p5, %s339_s13), 3  ;;  %s2625_s23 = smov 48   ;;  %2486 = vmatpush3.bf16.msra.mxu0 %v2483_v58 }
  0x15   : > { %s2527_s14 = smul.u32 448, %s3840_s13  ;;  %s2626_s24 = smov 56   ;;  %2488 = vmatprep.subr.bf16.mxu0 %v2487_v62 }
  0x16   : > { %s2627_s25 = smov 64   ;;  %s2368_s12 = sshll.u32 %s2602_s27, 2 }
  0x17   : > { %s2713_s17 = scalar_lea.vmem %s3741_s0, %s2527_s14  ;;  %s2369_s14 = sadd.s32 4294967295, %s2368_s12 }
  0x18   : > { %v2335_v0 = vld [vmem:[%s2713_s17 + $0xe0] sm:$0xff]  ;;  %v2321_v1 = vld [vmem:[%s2713_s17 + $0x70] sm:$0xff]  ;;  %v2725_v5 = vld [vmem:[%s2713_s17 + $0x8] sm:$0x7]  ;;  %2490 = vmatpush3.bf16.msra.mxu0 %v2487_v62  ;;  %s2384_s15 = sshll.u32 %s3840_s13, 5 }
  0x19   : > { %547 = vrot.lane.b32.xlu1 %v2335_v0, %s2620_s18  ;;  %432 = vrot.lane.b32.xlu0 %v2321_v1, %s2621_s19  ;;  %v2323_v2 = vld [vmem:[%s2713_s17 + $0x80] sm:$0xff]  ;;  %v2347_v3 = vld [vmem:[%s2713_s17 + $0x150] sm:$0xff]  ;;  %v482_v7 = vrot.slane %v2725_v5, 1  ;;  %v631_v12 = vrot.slane %v2335_v0, 1  ;;  %s3533_s28 = scalar_lea.vmem %s3749_s8, %s2384_s15 }
  0x1a   : > { %v2722_v4 = vld [vmem:[%s2713_s17] sm:$0xff]  ;;  %v2730_v8 = vld [vmem:[%s2713_s17 + $0x10] sm:$0xff]  ;;  %v2733_v9 = vld [vmem:[%s2713_s17 + $0x18] sm:$0x7] }
  0x1b   : > { %v481_v6 = vrot.slane %v2722_v4, 1  ;;  %v2736_v10 = vld [vmem:[%s2713_s17 + $0xe8] sm:$0x7]  ;;  %v2337_v11 = vld [vmem:[%s2713_s17 + $0xf0] sm:$0xff]  ;;  %v2322_v13 = vld [vmem:[%s2713_s17 + $0x78] sm:$0x7] }
  0x1c   : > { %v634_v14 = vrot.slane %v2337_v11, 1  ;;  %v484_v16 = vrot.slane %v2730_v8, 1  ;;  %v2745_v17 = vrot.slane %v2733_v9, 1  ;;  %v632_v18 = vrot.slane %v2736_v10, 1  ;;  %v2749_v19 = vld [vmem:[%s2713_s17 + $0xf8] sm:$0x7] }
  0x1d   : > { %436 = vrot.lane.b32.xlu1 %v2323_v2, %s2621_s19  ;;  %595 = vrot.lane.b32.xlu0 %v2347_v3, %s2622_s20  ;;  %v483_v15 = vsel %vm480_vm0, %v481_v6, %v482_v7  ;;  %v2752_v20 = vrot.slane %v2749_v19, 1  ;;  %v2339_v21 = vld [vmem:[%s2713_s17 + $0x100] sm:$0xff]  ;;  %v2766_v28 = vld [vmem:[%s2713_s17 + $0x108] sm:$0x7] }
  0x1e   : > { %v2349_v22 = vld [vmem:[%s2713_s17 + $0x160] sm:$0xff]  ;;  %v637_v24 = vrot.slane %v2339_v21, 1  ;;  %v486_v25 = vsel %vm480_vm0, %v484_v16, %v2745_v17  ;;  %v633_v26 = vsel %vm480_vm0, %v631_v12, %v632_v18  ;;  %v2325_v29 = vld [vmem:[%s2713_s17 + $0x90] sm:$0xff]  ;;  %v2770_v30 = vrot.slane %v2766_v28, 1  ;;  %v2789_v36 = vld [vmem:[%s2713_s17 + $0x28] sm:$0x7] }
  0x1f   : > { %3769 = vst [vmem:[#allocation2_spill] sm:$0xff] %v2752_v20  ;;  %v636_v23 = vsel %vm480_vm0, %v634_v14, %v2752_v20  ;;  %v2777_v32 = vld [vmem:[%s2713_s17 + $0x170] sm:$0xff]  ;;  %v2786_v35 = vld [vmem:[%s2713_s17 + $0x20] sm:$0xff]  ;;  %v2795_v38 = vrot.slane %v2789_v36, 1  ;;  %v2324_v40 = vld [vmem:[%s2713_s17 + $0x88] sm:$0x7] }
  0x20   : > { %v1727_v27 = vmax.f32 %v2349_v22, %v636_v23  ;;  %v2781_v33 = vsel %vm480_vm0, %v637_v24, %v2770_v30  ;;  %v487_v37 = vrot.slane %v2786_v35, 1  ;;  %v2348_v41 = vld [vmem:[%s2713_s17 + $0x158] sm:$0x7]  ;;  %v2327_v42 = vld [vmem:[%s2713_s17 + $0xa0] sm:$0xff]  ;;  %v2820_v43 = vld [vmem:[%s2713_s17 + $0x30] sm:$0xff] }
  0x21   : > { %434 = vrot.lane.b32.xlu1 %v2322_v13, %s2621_s19  ;;  %499 = vrot.lane.b32.xlu0 %v483_v15, %s2623_s21  ;;  %3771 = vst [vmem:[#allocation4_spill] sm:$0xff] %v2795_v38  ;;  %v2823_v44 = vld [vmem:[%s2713_s17 + $0x38] sm:$0x7]  ;;  %v2830_v45 = vld [vmem:[%s2713_s17 + $0xb0] sm:$0xff]  ;;  %v490_v47 = vrot.slane %v2820_v43, 1 }
  0x22   : > { %v2772_v31 = vmax.f32 %v1727_v27, %v2325_v29  ;;  %v2802_v39 = vsel %vm480_vm0, %v487_v37, %v2795_v38  ;;  %v2833_v46 = vld [vmem:[%s2713_s17 + $0x98] sm:$0x7]  ;;  %v2837_v48 = vrot.slane %v2823_v44, 1  ;;  %v2852_v50 = vld [vmem:[%s2713_s17 + $0x40] sm:$0xff]  ;;  %v2855_v51 = vld [vmem:[%s2713_s17 + $0x48] sm:$0x7] }
  0x23   : > { %3772 = vst [vmem:[#allocation5_spill] sm:$0xff] %v2802_v39  ;;  %v493_v52 = vrot.slane %v2852_v50, 1  ;;  %v2864_v53 = vrot.slane %v2855_v51, 1  ;;  %v2341_v55 = vld [vmem:[%s2713_s17 + $0x110] sm:$0xff]  ;;  %v2343_v59 = vld [vmem:[%s2713_s17 + $0x120] sm:$0xff] }
  0x24   : > { %3770 = vst [vmem:[#allocation3_spill] sm:$0xff] %v2772_v31  ;;  %3773 = vst [vmem:[#allocation6_spill] sm:$0xff] %v2837_v48  ;;  %v2845_v49 = vsel %vm480_vm0, %v490_v47, %v2837_v48  ;;  %v2902_v63 = vld [vmem:[%s2713_s17 + $0x180] sm:$0xff]  ;;  %v2905_v0 = vld [vmem:[%s2713_s17 + $0x168] sm:$0x7]  ;;  %v640_v14 = vrot.slane %v2341_v55, 1 }
  0x25   : > { %503 = vrot.lane.b32.xlu1 %v486_v25, %s2623_s21  ;;  %649 = vrot.lane.b32.xlu0 %v633_v26, %s2624_s22  ;;  %3774 = vst [vmem:[#allocation7_spill] sm:$0xff] %v2845_v49  ;;  %3775 = vst [vmem:[#allocation8_spill] sm:$0xff] %v2864_v53  ;;  %v2871_v54 = vsel %vm480_vm0, %v493_v52, %v2864_v53  ;;  %v1064_v1 = vld [vmem:[%s3742_s1 + $0x20] sm:$0xff]  ;;  %v1066_v6 = vld [vmem:[%s3742_s1 + $0x30] sm:$0xff] }
  0x26   : > { %3776 = vst [vmem:[#allocation9_spill] sm:$0xff] %v2871_v54  ;;  %3777 = vst [vmem:[#allocation10_spill] sm:$0xff] %v2905_v0  ;;  %v2342_v13 = vld [vmem:[%s2713_s17 + $0x118] sm:$0x7]  ;;  %v2937_v15 = vld [vmem:[%s2713_s17 + $0x190] sm:$0xff] }
  0x27   : > { %v2939_v16 = vrot.slane %v2342_v13, 1  ;;  %v2345_v58 = vld [vmem:[%s2713_s17 + $0x130] sm:$0xff] }
  0x29   : > { %551 = vrot.lane.b32.xlu1 %v2337_v11, %s2620_s18  ;;  %440 = vrot.lane.b32.xlu0 %v2325_v29, %s2621_s19  ;;  %v2929_v11 = vld [vmem:[%s2713_s17 + $0xa8] sm:$0x7] }
  0x2d   : > { %501 = vrot.lane.b32.xlu1 %v482_v7, %s2623_s21  ;;  %687 = vrot.lane.b32.xlu0 %v2730_v8, %s2625_s23  ;;  %v1067_v7 = vld [vmem:[%s3742_s1 + $0x38] sm:$0xff] }
  0x2e   : > { %v2495_v12 = vpack.c.bf16 %v1067_v7, %v1066_v6  ;;  %v2628_v6 = vmov 1983009808  }
  0x2f   : > { %v918_v7 = vunpack.c.l.s4 %v2628_v6 }
  0x31   : > { %599 = vrot.lane.b32.xlu1 %v2349_v22, %s2622_s20  ;;  %507 = vrot.lane.b32.xlu0 %v2802_v39, %s2623_s21  ;;  %v643_v22 = vrot.slane %v2343_v59, 1 }
  0x35   : > { %549 = vrot.lane.b32.xlu1 %v2736_v10, %s2620_s18  ;;  %725 = vrot.lane.b32.xlu0 %v2323_v2, %s2626_s24  ;;  %v1065_v2 = vld [vmem:[%s3742_s1 + $0x28] sm:$0xff]  ;;  %v2926_v10 = vld [vmem:[%s2713_s17 + $0x178] sm:$0x7] }
  0x36   : > { %v2491_v3 = vpack.c.bf16 %v1065_v2, %v1064_v1 }
  0x38   : > { %2492 = vmatprep.subr.bf16.mxu0 %v2491_v3 }
  0x39   : > { %653 = vrot.lane.b32.xlu1 %v636_v23, %s2624_s22  ;;  %555 = vrot.lane.b32.xlu0 %v2339_v21, %s2620_s18  ;;  %v2953_v21 = vld [vmem:[%s2713_s17 + $0x128] sm:$0x7] }
  0x3a   : > { %2494 = vmatpush3.bf16.msra.mxu0 %v2491_v3  ;;  %v2960_v23 = vrot.slane %v2953_v21, 1 }
  0x3b   : > { %2496 = vmatprep.subr.bf16.mxu0 %v2495_v12 }
  0x3c   : > { %3778 = vst [vmem:[#allocation11_spill] sm:$0xff] %v2960_v23  ;;  %v2968_v24 = vsel %vm480_vm0, %v643_v22, %v2960_v23  ;;  %v919_v22 = vunpack.c.0.s8 %v918_v7 }
  0x3d   : > { %438 = vrot.lane.b32.xlu1 %v2324_v40, %s2621_s19  ;;  %764 = vrot.lane.b32.xlu0 %v486_v25, %s2627_s25  ;;  %v2985_v25 = vld [vmem:[%s2713_s17 + $0x50] sm:$0xff] }
  0x3e   : > { %2498 = vmatpush3.bf16.msra.mxu0 %v2495_v12  ;;  %v920_v12 = vlaneseq }
  0x41   : > { %597 = vrot.lane.b32.xlu1 %v2348_v41, %s2622_s20  ;;  %444 = vrot.lane.b32.xlu0 %v2327_v42, %s2621_s19 }
  0x45   : > { %691 = vrot.lane.b32.xlu1 %v2786_v35, %s2625_s23  ;;  %603 = vrot.lane.b32.xlu0 %v2777_v32, %s2622_s20 }
  0x49   : > { %448 = vrot.lane.b32.xlu1 %v2830_v45, %s2621_s19  ;;  %442 = vrot.lane.b32.xlu0 %v2833_v46, %s2621_s19 }
  0x4d   : > { %511 = vrot.lane.b32.xlu1 %v2845_v49, %s2623_s21  ;;  %505 = vrot.lane.b32.xlu0 %v2745_v17, %s2623_s21 }
  0x51   : > { %657 = vrot.lane.b32.xlu1 %v2781_v33, %s2624_s22  ;;  %651 = vrot.lane.b32.xlu0 %v632_v18, %s2624_s22  ;;  %v1068_v18 = vld [vmem:[%s3742_s1 + $0x40] sm:$0xff] }
  0x52   : > { %2437 = vmatprep.subr.mxu0 %v1068_v18 }
  0x53   : > { %2438 = vmatpush3.msra.mxu0 %v1068_v18  ;;  %v3055_v18 = vld [vmem:[%s2713_s17 + $0x138] sm:$0x7] }
  0x55   : > { %509 = vrot.lane.b32.xlu1 %v2795_v38, %s2623_s21  ;;  %729 = vrot.lane.b32.xlu0 %v2325_v29, %s2626_s24  ;;  %v496_v29 = vrot.slane %v2985_v25, 1 }
  0x59   : > { %553 = vrot.lane.b32.xlu1 %v2749_v19, %s2620_s18  ;;  %515 = vrot.lane.b32.xlu0 %v2871_v54, %s2623_s21  ;;  %v2950_v19 = vsel %vm480_vm0, %v640_v14, %v2939_v16 }
  0x5d   : > { %689 = vrot.lane.b32.xlu1 %v2733_v9, %s2625_s23  ;;  %559 = vrot.lane.b32.xlu0 %v2341_v55, %s2620_s18 }
  0x61   : > { %768 = vrot.lane.b32.xlu1 %v2802_v39, %s2627_s25  ;;  %695 = vrot.lane.b32.xlu0 %v2820_v43, %s2625_s23 }
  0x65   : > { %563 = vrot.lane.b32.xlu1 %v2343_v59, %s2620_s18  ;;  %557 = vrot.lane.b32.xlu0 %v2766_v28, %s2620_s18  ;;  %v2988_v28 = vld [vmem:[%s2713_s17 + $0x58] sm:$0x7] }
  0x66   : > { %v2996_v37 = vrot.slane %v2988_v28, 1  ;;  %v3033_v59 = vld [vmem:[%s2713_s17 + $0xb8] sm:$0x7] }
  0x67   : > { %3782 = vst [vmem:[#allocation15_spill] sm:$0xff] %v3033_v59 }
  0x68   : > { %3780 = vst [vmem:[#allocation13_spill] sm:$0xff] %v2996_v37  ;;  %v3009_v47 = vsel %vm480_vm0, %v496_v29, %v2996_v37 }
  0x69   : > { %607 = vrot.lane.b32.xlu1 %v2902_v63, %s2622_s20  ;;  %601 = vrot.lane.b32.xlu0 %v2905_v0, %s2622_s20  ;;  %3781 = vst [vmem:[#allocation14_spill] sm:$0xff] %v3009_v47 }
  0x6d   : > { %733 = vrot.lane.b32.xlu1 %v2327_v42, %s2626_s24  ;;  %727 = vrot.lane.b32.xlu0 %v2324_v40, %s2626_s24  ;;  %v3005_v42 = vld [vmem:[%s2713_s17 + $0x188] sm:$0x7] }
  0x71   : > { %605 = vrot.lane.b32.xlu1 %v2926_v10, %s2622_s20  ;;  %446 = vrot.lane.b32.xlu0 %v2929_v11, %s2621_s19 }
  0x75   : > { %655 = vrot.lane.b32.xlu1 %v2752_v20, %s2624_s22  ;;  %611 = vrot.lane.b32.xlu0 %v2937_v15, %s2622_s20 }
  0x79   : > { %766 = vrot.lane.b32.xlu1 %v2745_v17, %s2627_s25  ;;  %661 = vrot.lane.b32.xlu0 %v2950_v19, %s2624_s22  ;;  %v2979_v17 = vld [vmem:[%s2713_s17 + $0xc0] sm:$0xff] }
  0x7a   : > { %3779 = vst [vmem:[#allocation12_spill] sm:$0xff] %v2979_v17 }
  0x7d   : > { %513 = vrot.lane.b32.xlu1 %v2837_v48, %s2623_s21  ;;  %772 = vrot.lane.b32.xlu0 %v2845_v49, %s2627_s25  ;;  %v3785_v49 = vrot.slane %v3055_v18, 1 }
  0x81   : > { %665 = vrot.lane.b32.xlu1 %v2968_v24, %s2624_s22  ;;  %659 = vrot.lane.b32.xlu0 %v2770_v30, %s2624_s22 }
  0x85   : > { %699 = vrot.lane.b32.xlu1 %v2852_v50, %s2625_s23  ;;  %693 = vrot.lane.b32.xlu0 %v2789_v36, %s2625_s23 }
  0x89   : > { %561 = vrot.lane.b32.xlu1 %v2342_v13, %s2620_s18  ;;  %452 = vrot.lane.b32.xlu0 %v2979_v17, %s2621_s19 }
  0x8b   : > { %v548_v26 = vpop.permute.xlu1 %547  ;;  %v433_v27 = vpop.permute.xlu0 %432 }
  0x8c   : > { %v801_v62 = vsel %vm800_vm1, %v2722_v4, %v433_v27  ;;  %v3061_v27 = vshrl.u32 %v920_v12, 7 }
  0x8d   : > { %703 = vrot.lane.b32.xlu1 %v2985_v25, %s2625_s23  ;;  %697 = vrot.lane.b32.xlu0 %v2823_v44, %s2625_s23 }
  0x8f   : > { %v2998_v40 = vpop.permute.xlu1 %436  ;;  %v596_v41 = vpop.permute.xlu0 %595 }
  0x91   : > { %737 = vrot.lane.b32.xlu1 %v2830_v45, %s2626_s24  ;;  %731 = vrot.lane.b32.xlu0 %v2833_v46, %s2626_s24 }
  0x93   : > { %v3011_v52 = vpop.permute.xlu1 %434  ;;  %v500_v55 = vpop.permute.xlu0 %499 }
  0x94   : > { %v814_v3 = vsel %vm813_vm2, %v801_v62, %v500_v55  ;;  %v646_v55 = vrot.slane %v2345_v58, 1  ;;  %v3751_v62 = vrot.slane %v3055_v18, 1 }
  0x95   : > { %609 = vrot.lane.b32.xlu1 %v3005_v42, %s2622_s20  ;;  %519 = vrot.lane.b32.xlu0 %v3009_v47, %s2623_s21  ;;  %v827_v13 = vsel %vm826_vm3, %v814_v3, %v548_v26  ;;  %v2357_v26 = vld [vmem:[%s2713_s17 + $0x1a0] sm:$0xff] }
  0x96   : > { %v840_v29 = vsel %vm839_vm4, %v827_v13, %v596_v41  ;;  %v3075_v41 = vsub.s32 %v919_v22, %v3061_v27  ;;  %v648_v7 = vsel %vm480_vm0, %v646_v55, %v3751_v62 }
  0x97   : > { %v3017_v45 = vpop.permute.xlu1 %503  ;;  %v650_v56 = vpop.permute.xlu0 %649 }
  0x98   : > { %v853_v34 = vsel %vm852_vm5, %v840_v29, %v650_v56 }
  0x99   : > { %741 = vrot.lane.b32.xlu1 %v2979_v17, %s2626_s24  ;;  %735 = vrot.lane.b32.xlu0 %v2929_v11, %s2626_s24 }
  0x9b   : > { %v3023_v46 = vpop.permute.xlu1 %551  ;;  %v3025_v57 = vpop.permute.xlu0 %440 }
  0x9d   : > { %776 = vrot.lane.b32.xlu1 %v2871_v54, %s2627_s25  ;;  %770 = vrot.lane.b32.xlu0 %v2795_v38, %s2627_s25 }
  0x9f   : > { %v3035_v60 = vpop.permute.xlu1 %501  ;;  %v688_v61 = vpop.permute.xlu0 %687 }
  0xa1   : > { %567 = vrot.lane.b32.xlu1 %v2345_v58, %s2620_s18  ;;  %450 = vrot.lane.b32.xlu0 %v3033_v59, %s2621_s19  ;;  %v866_v58 = vsel %vm865_vm6, %v853_v34, %v688_v61  ;;  %v3090_v34 = vld [vmem:[%s2713_s17 + $0xc8] sm:$0x7] }
  0xa2   : > { %3783 = vst [vmem:[#allocation16_spill] sm:$0xff] %v3090_v34 }
  0xa3   : > { %v3042_v1 = vpop.permute.xlu1 %599  ;;  %v3044_v2 = vpop.permute.xlu0 %507 }
  0xa5   : > { %774 = vrot.lane.b32.xlu1 %v2837_v48, %s2627_s25  ;;  %663 = vrot.lane.b32.xlu0 %v2939_v16, %s2624_s22 }
  0xa7   : > { %v3052_v4 = vpop.permute.xlu1 %549  ;;  %v726_v14 = vpop.permute.xlu0 %725 }
  0xa8   : > { %v879_v12 = vsel %vm3768_vm7, %v866_v58, %v726_v14 }
  0xa9   : > { %517 = vrot.lane.b32.xlu1 %v2864_v53, %s2623_s21  ;;  %780 = vrot.lane.b32.xlu0 %v3009_v47, %s2627_s25 }
  0xab   : > { %v3066_v3 = vpop.permute.xlu1 %653  ;;  %v3068_v6 = vpop.permute.xlu0 %555 }
  0xad   : > { %701 = vrot.lane.b32.xlu1 %v2855_v51, %s2625_s23  ;;  %615 = vrot.lane.b32.xlu0 %v2357_v26, %s2622_s20 }
  0xaf   : > { %v3082_v13 = vpop.permute.xlu1 %438  ;;  %v765_v56 = vpop.permute.xlu0 %764 }
  0xb0   : > { %v892_v29 = vsel %vm3767_vm8, %v879_v12, %v765_v56 }
  0xb1   : > { %v916_v26 = vcombine.high %v892_v29, %v892_v29  ;;  %v923_v38 = vrot.slane %v892_v29, %v3075_v41  ;;  %669 = vrot.lane.b32.xlu1 %v648_v7, %s2624_s22  ;;  %565 = vrot.lane.b32.xlu0 %v2953_v21, %s2620_s18  ;;  %v377_v7 = vld [vmem:[%s2713_s17 + $0x60] sm:$0xff]  ;;  %v3103_v21 = vld [vmem:[%s2713_s17 + $0x198] sm:$0x7] }
  0xb2   : > { %3784 = vst [vmem:[#allocation17_spill] sm:$0xff] %v3103_v21 }
  0xb3   : > { %v930_v61 = vrot.slane %v916_v26, %v3075_v41  ;;  %v931_v14 = vcombine.high %v923_v38, %v923_v38  ;;  %v3093_v22 = vpop.permute.xlu1 %597  ;;  %v3095_v55 = vpop.permute.xlu0 %444 }
  0xb5   : > { %v932_v58 = vcombine.high %v930_v61, %v930_v61  ;;  %v1076_v62 = vcombine.low %v923_v38, %v931_v14  ;;  %454 = vrot.lane.b32.xlu1 %v3090_v34, %s2621_s19  ;;  %739 = vrot.lane.b32.xlu0 %v3033_v59, %s2626_s24 }
  0xb7   : > { %v692_v12 = vpop.permute.xlu1 %691  ;;  %v3105_v56 = vpop.permute.xlu0 %603  ;;  %v1077_v29 = vcombine.low %v930_v61, %v932_v58  ;;  %v1084_v38 = vrot.slane %v1076_v62, %v3075_v41  ;;  %v2333_v61 = vld [vmem:[%s2713_s17 + $0xd0] sm:$0xff] }
  0xb9   : > { %707 = vrot.lane.b32.xlu1 %v377_v7, %s2625_s23  ;;  %613 = vrot.lane.b32.xlu0 %v3103_v21, %s2622_s20  ;;  %v1091_v26 = vrot.slane %v1077_v29, %v3075_v41  ;;  %v378_v29 = vld [vmem:[%s2713_s17 + $0x68] sm:$0x7] }
  0xbb   : > { %v449_v14 = vpop.permute.xlu1 %448  ;;  %v3112_v31 = vpop.permute.xlu0 %442  ;;  %v1092_v39 = vcombine.low %v1084_v38, %v1091_v26  ;;  %v761_v38 = vrot.slane %v377_v7, 1  ;;  %v762_v26 = vrot.slane %v378_v29, 1 }
  0xbd   : > { %521 = vrot.lane.b32.xlu1 %v2996_v37, %s2623_s21  ;;  %778 = vrot.lane.b32.xlu0 %v2864_v53, %s2627_s25  ;;  %v763_v53 = vsel %vm480_vm0, %v761_v38, %v762_v26  ;;  %v2334_v38 = vld [vmem:[%s2713_s17 + $0xd8] sm:$0x7] }
  0xbe   : > { %2439 = vmatprep.mubr.msk.f32.mxu0 %vm3766_vm9, %v1092_v39  ;;  %v2358_v39 = vld [vmem:[%s2713_s17 + $0x1a8] sm:$0x7] }
  0xbf   : > { %v3120_v58 = vpop.permute.xlu1 %511  ;;  %v3122_v62 = vpop.permute.xlu0 %505 }
  0xc1   : > { %745 = vrot.lane.b32.xlu1 %v2333_v61, %s2626_s24  ;;  %667 = vrot.lane.b32.xlu0 %v2960_v23, %s2624_s22 }
  0xc3   : > { %v3128_v47 = vpop.permute.xlu1 %657  ;;  %v652_v54 = vpop.permute.xlu0 %651 }
  0xc5   : > { %705 = vrot.lane.b32.xlu1 %v2988_v28, %s2625_s23  ;;  %569 = vrot.lane.b32.xlu0 %v3055_v18, %s2620_s18  ;;  %v803_v18 = vsel %vm800_vm1, %v2730_v8, %v2998_v40 }
  0xc6   : > { %v816_v21 = vsel %vm813_vm2, %v803_v18, %v3017_v45 }
  0xc7   : > { %v3136_v17 = vpop.permute.xlu1 %509  ;;  %v730_v61 = vpop.permute.xlu0 %729 }
  0xc9   : > { %617 = vrot.lane.b32.xlu1 %v2358_v39, %s2622_s20  ;;  %784 = vrot.lane.b32.xlu0 %v763_v53, %s2627_s25 }
  0xcb   : > { %v3140_v7 = vpop.permute.xlu1 %553  ;;  %v516_v48 = vpop.permute.xlu0 %515 }
  0xcd   : > { %671 = vrot.lane.b32.xlu1 %v3785_v49, %s2624_s22  ;;  %743 = vrot.lane.b32.xlu0 %v3090_v34, %s2626_s24  ;;  %v809_v49 = vsel %vm800_vm1, %v2852_v50, %v449_v14  ;;  %v829_v50 = vsel %vm826_vm3, %v816_v21, %v3023_v46  ;;  %v802_v46 = vsel %vm800_vm1, %v2725_v5, %v3011_v52 }
  0xce   : > { %v842_v8 = vsel %vm839_vm4, %v829_v50, %v3042_v1 }
  0xcf   : > { %v690_v59 = vpop.permute.xlu1 %689  ;;  %v3147_v0 = vpop.permute.xlu0 %559 }
  0xd1   : > { %709 = vrot.lane.b32.xlu1 %v378_v29, %s2625_s23  ;;  %782 = vrot.lane.b32.xlu0 %v2996_v37, %s2627_s25  ;;  %v822_v29 = vsel %vm813_vm2, %v809_v49, %v516_v48  ;;  %v855_v48 = vsel %vm852_vm5, %v842_v8, %v3066_v3  ;;  %v815_v3 = vsel %vm813_vm2, %v802_v46, %v3035_v60 }
  0xd3   : > { %v769_v53 = vpop.permute.xlu1 %768  ;;  %v3153_v39 = vpop.permute.xlu0 %695 }
  0xd5   : > { %747 = vrot.lane.b32.xlu0 %v2334_v38, %s2626_s24  ;;  %786 = vrot.lane.b32.xlu1 %v762_v26, %s2627_s25 }
  0xd7   : > { %v564_v34 = vpop.permute.xlu1 %563  ;;  %v3163_v20 = vpop.permute.xlu0 %557 }
  0xd8   : > { %v835_v37 = vsel %vm826_vm3, %v822_v29, %v564_v34  ;;  %v868_v34 = vsel %vm865_vm6, %v855_v48, %v692_v12  ;;  %v828_v12 = vsel %vm826_vm3, %v815_v3, %v3052_v4 }
  0xd9   : > { %v881_v49 = vsel %vm3768_vm7, %v868_v34, %v730_v61 }
  0xda   : > { %v894_v45 = vsel %vm3767_vm8, %v881_v49, %v769_v53  ;;  %v841_v53 = vsel %vm839_vm4, %v828_v12, %v3093_v22 }
  0xdb   : > { %v3168_v38 = vpop.permute.xlu1 %607  ;;  %v3170_v26 = vpop.permute.xlu0 %601  ;;  %v940_v1 = vcombine.high %v894_v45, %v894_v45  ;;  %v947_v21 = vrot.slane %v894_v45, %v3075_v41  ;;  %v854_v48 = vsel %vm852_vm5, %v841_v53, %v652_v54 }
  0xdc   : > { %v867_v34 = vsel %vm865_vm6, %v854_v48, %v690_v59 }
  0xdd   : > { %v3200_v5 = vrot.slane %v940_v1, %v3075_v41  ;;  %v955_v52 = vcombine.high %v947_v21, %v947_v21 }
  0xdf   : > { %v734_v40 = vpop.permute.xlu1 %733  ;;  %v728_v14 = vpop.permute.xlu0 %727  ;;  %v1094_v46 = vcombine.low %v955_v52, %v3200_v5 }
  0xe0   : > { %v880_v60 = vsel %vm3768_vm7, %v867_v34, %v728_v14 }
  0xe1   : > { %v1108_v1 = vrot.slane %v1094_v46, %v3075_v41 }
  0xe3   : > { %v3181_v18 = vpop.permute.xlu1 %605  ;;  %v3183_v29 = vpop.permute.xlu0 %446 }
  0xe7   : > { %v656_v61 = vpop.permute.xlu1 %655  ;;  %v612_v50 = vpop.permute.xlu0 %611 }
  0xe8   : > { %v3196_v8 = vsel %vm839_vm4, %v835_v37, %v612_v50 }
  0xeb   : > { %v767_v49 = vpop.permute.xlu1 %766  ;;  %v662_v4 = vpop.permute.xlu0 %661 }
  0xec   : > { %v893_v45 = vsel %vm3767_vm8, %v880_v60, %v767_v49 }
  0xed   : > { %v939_v22 = vrot.slane %v893_v45, %v3075_v41 }
  0xef   : > { %v1093_v37 = vcombine.low %v939_v22, %v947_v21  ;;  %v3207_v3 = vpop.permute.xlu1 %513  ;;  %v773_v54 = vpop.permute.xlu0 %772  ;;  %v805_v21 = vsel %vm800_vm1, %v2786_v35, %v3025_v57 }
  0xf0   : > { %v818_v45 = vsel %vm813_vm2, %v805_v21, %v3044_v2 }
  0xf1   : > { %v1101_v12 = vrot.slane %v1093_v37, %v3075_v41  ;;  %v831_v46 = vsel %vm826_vm3, %v818_v45, %v3068_v6  ;;  %v804_v6 = vsel %vm800_vm1, %v2733_v9, %v3082_v13  ;;  %v807_v9 = vsel %vm800_vm1, %v2820_v43, %v3095_v55 }
  0xf2   : > { %v844_v22 = vsel %vm839_vm4, %v831_v46, %v3105_v56 }
  0xf3   : > { %v3211_v50 = vpop.permute.xlu1 %665  ;;  %v660_v59 = vpop.permute.xlu0 %659  ;;  %v1109_v14 = vcombine.low %v1101_v12, %v1108_v1  ;;  %v857_v37 = vsel %vm852_vm5, %v844_v22, %v3128_v47  ;;  %v817_v47 = vsel %vm813_vm2, %v804_v6, %v3122_v62  ;;  %v806_v62 = vsel %vm800_vm1, %v2789_v36, %v3112_v31 }
  0xf4   : > { %v870_v35 = vsel %vm865_vm6, %v857_v37, %v3153_v39  ;;  %v830_v39 = vsel %vm826_vm3, %v817_v47, %v3140_v7  ;;  %v820_v7 = vsel %vm813_vm2, %v807_v9, %v3120_v58  ;;  %v956_v31 = vcombine.high %v3200_v5, %v3200_v5 }
  0xf5   : > { %2440 = vmatmul.mubr.msk.f32.vlgmr.msra.gmra.mrb[0].mxu0 %vm3766_vm9, %v1109_v14  ;;  %v883_v57 = vsel %vm3768_vm7, %v870_v35, %v734_v40 }
  0xf6   : > { %v896_v14 = vsel %vm3767_vm8, %v883_v57, %v773_v54  ;;  %v843_v54 = vsel %vm839_vm4, %v830_v39, %v3170_v26  ;;  %v833_v57 = vsel %vm826_vm3, %v820_v7, %v3147_v0 }
  0xf7   : > { %v700_v53 = vpop.permute.xlu1 %699  ;;  %v694_v48 = vpop.permute.xlu0 %693  ;;  %v971_v56 = vrot.slane %v896_v14, %v3075_v41  ;;  %v856_v45 = vsel %vm852_vm5, %v843_v54, %v656_v61  ;;  %v964_v46 = vcombine.high %v896_v14, %v896_v14  ;;  %v819_v61 = vsel %vm813_vm2, %v806_v62, %v3136_v17 }
  0xf8   : > { %v869_v13 = vsel %vm865_vm6, %v856_v45, %v694_v48  ;;  %v832_v58 = vsel %vm826_vm3, %v819_v61, %v3163_v20 }
  0xf9   : > { %v979_v22 = vcombine.high %v971_v56, %v971_v56  ;;  %v978_v55 = vrot.slane %v964_v46, %v3075_v41  ;;  %v845_v17 = vsel %vm839_vm4, %v832_v58, %v3181_v18 }
  0xfa   : > { %v858_v5 = vsel %vm852_vm5, %v845_v17, %v660_v59 }
  0xfb   : > { %v3214_v34 = vpop.permute.xlu1 %561  ;;  %v3216_v52 = vpop.permute.xlu0 %452  ;;  %v1111_v48 = vcombine.low %v971_v56, %v979_v22  ;;  %v980_v39 = vcombine.high %v978_v55, %v978_v55 }
  0xfd   : > { %v1125_v20 = vrot.slane %v1111_v48, %v3075_v41 }
  0xff   : > { %v3221_v60 = vpop.permute.xlu1 %703  ;;  %v698_v49 = vpop.permute.xlu0 %697 }
 0x100   : > { %v871_v18 = vsel %vm865_vm6, %v858_v5, %v698_v49 }
 0x103   : > { %v738_v1 = vpop.permute.xlu1 %737  ;;  %v732_v12 = vpop.permute.xlu0 %731 }
 0x104   : > { %v882_v37 = vsel %vm3768_vm7, %v869_v13, %v732_v12  ;;  %v846_v12 = vsel %vm839_vm4, %v833_v57, %v3168_v38  ;;  %v1127_v13 = vcombine.low %v978_v55, %v980_v39 }
 0x105   : > { %v859_v0 = vsel %vm852_vm5, %v846_v12, %v662_v4 }
 0x106   : > { %v872_v47 = vsel %vm865_vm6, %v859_v0, %v700_v53 }
 0x107   : > { %v3235_v23 = vpop.permute.xlu1 %609  ;;  %v3237_v2 = vpop.permute.xlu0 %519  ;;  %v885_v54 = vsel %vm3768_vm7, %v872_v47, %v738_v1 }
 0x10b   : > { %v742_v21 = vpop.permute.xlu1 %741  ;;  %v736_v40 = vpop.permute.xlu0 %735 }
 0x10c   : > { %v884_v45 = vsel %vm3768_vm7, %v871_v18, %v736_v40 }
 0x10f   : > { %v777_v26 = vpop.permute.xlu1 %776  ;;  %v771_v35 = vpop.permute.xlu0 %770 }
 0x110   : > { %v895_v43 = vsel %vm3767_vm8, %v882_v37, %v771_v35  ;;  %v898_v4 = vsel %vm3767_vm8, %v885_v54, %v777_v26  ;;  %v1135_v37 = vrot.slane %v1127_v13, %v3075_v41  ;;  %v861_v26 = vsel %vm852_vm5, %v3196_v8, %v3211_v50 }
 0x111   : > { %v963_v36 = vrot.slane %v895_v43, %v3075_v41  ;;  %v995_v53 = vrot.slane %v898_v4, %v3075_v41  ;;  %v874_v35 = vsel %vm865_vm6, %v861_v26, %v3221_v60  ;;  %v808_v8 = vsel %vm800_vm1, %v2823_v44, %v3183_v29 }
 0x112   : > { %v887_v55 = vsel %vm3768_vm7, %v874_v35, %v742_v21  ;;  %v988_v50 = vcombine.high %v898_v4, %v898_v4  ;;  %v821_v60 = vsel %vm813_vm2, %v808_v8, %v3207_v3 }
 0x113   : > { %v1110_v14 = vcombine.low %v956_v31, %v963_v36  ;;  %v3276_v6 = vpop.permute.xlu1 %567  ;;  %v3278_v56 = vpop.permute.xlu0 %450 }
 0x114   : > { %v1002_v54 = vrot.slane %v988_v50, %v3075_v41  ;;  %v810_v50 = vsel %vm800_vm1, %v2855_v51, %v3278_v56 }
 0x115   : > { %v1118_v38 = vrot.slane %v1110_v14, %v3075_v41  ;;  %v834_v14 = vsel %vm826_vm3, %v821_v60, %v3214_v34 }
 0x116   : > { %v847_v39 = vsel %vm839_vm4, %v834_v14, %v3235_v23 }
 0x117   : > { %v775_v46 = vpop.permute.xlu1 %774  ;;  %v664_v22 = vpop.permute.xlu0 %663  ;;  %v1126_v9 = vcombine.low %v1118_v38, %v1125_v20  ;;  %v1003_v38 = vcombine.high %v995_v53, %v995_v53 }
 0x118   : > { %v897_v59 = vsel %vm3767_vm8, %v884_v45, %v775_v46  ;;  %v860_v44 = vsel %vm852_vm5, %v847_v39, %v664_v22 }
 0x119   : > { %v987_v62 = vrot.slane %v897_v59, %v3075_v41  ;;  %2442 = vmatprep.mubr.msk.f32.mxu0 %vm3766_vm9, %v1126_v9  ;;  %v1144_v9 = vcombine.low %v1003_v38, %v1002_v54  ;;  %v1004_v59 = vcombine.high %v1002_v54, %v1002_v54 }
 0x11b   : > { %v1128_v1 = vcombine.low %v987_v62, %v995_v53  ;;  %v3292_v7 = vpop.permute.xlu1 %517  ;;  %v781_v49 = vpop.permute.xlu0 %780 }
 0x11c   : > { %v900_v48 = vsel %vm3767_vm8, %v887_v55, %v781_v49  ;;  %v811_v49 = vsel %vm800_vm1, %v2985_v25, %v3216_v52 }
 0x11d   : > { %v1142_v40 = vrot.slane %v1128_v1, %v3075_v41  ;;  %v1012_v58 = vcombine.high %v900_v48, %v900_v48  ;;  %v1019_v21 = vrot.slane %v900_v48, %v3075_v41  ;;  %v824_v26 = vsel %vm813_vm2, %v811_v49, %v3237_v2 }
 0x11f   : > { %v702_v61 = vpop.permute.xlu1 %701  ;;  %v616_v57 = vpop.permute.xlu0 %615  ;;  %v1143_v43 = vcombine.low %v1135_v37, %v1142_v40  ;;  %v1026_v0 = vrot.slane %v1012_v58, %v3075_v41  ;;  %v1027_v29 = vcombine.high %v1019_v21, %v1019_v21  ;;  %v1152_v37 = vrot.slane %v1144_v9, %v3075_v41 }
 0x120   : > { %v873_v18 = vsel %vm865_vm6, %v860_v44, %v702_v61  ;;  %v837_v61 = vsel %vm826_vm3, %v824_v26, %v3276_v6 }
 0x121   : > { %2443 = vmatmul.mubr.msk.f32.gmra.mrb[2].mxu0 %vm3766_vm9, %v1143_v43  ;;  %v1028_v20 = vcombine.high %v1026_v0, %v1026_v0  ;;  %v1161_v13 = vcombine.low %v1019_v21, %v1027_v29  ;;  %v850_v58 = vsel %vm839_vm4, %v837_v61, %v616_v57 }
 0x123   : > { %v670_v31 = vpop.permute.xlu1 %669  ;;  %v566_v36 = vpop.permute.xlu0 %565  ;;  %v1162_v46 = vcombine.low %v1026_v0, %v1028_v20  ;;  %v1169_v35 = vrot.slane %v1161_v13, %v3075_v41 }
 0x124   : > { %v863_v25 = vsel %vm852_vm5, %v850_v58, %v670_v31  ;;  %v823_v31 = vsel %vm813_vm2, %v810_v50, %v3292_v7  ;;  %v1478_v50 = vadd.s32 8, %v3061_v27 }
 0x125   : > { %v1176_v22 = vrot.slane %v1162_v46, %v3075_v41  ;;  %v836_v14 = vsel %vm826_vm3, %v823_v31, %v566_v36  ;;  %v3384_v31 = vadd.s32 4294967295, %v3061_v27 }
 0x127   : > { %v455_v12 = vpop.permute.xlu1 %454  ;;  %v740_v17 = vpop.permute.xlu0 %739  ;;  %vm1499_vm14 = vcmp.ge.s32.totalorder %v3384_v31, 0 }
 0x128   : > { %v886_v3 = vsel %vm3768_vm7, %v873_v18, %v740_v17  ;;  %v1177_v17 = vcombine.low %v1169_v35, %v1176_v22  ;;  %v812_v21 = vsel %vm800_vm1, %v2988_v28, %v455_v12  ;;  %v3371_v35 = vld [vmem:[%s3743_s2] ss:$0 sm:$0xff] }
 0x12b   : > { %v708_v5 = vpop.permute.xlu1 %707  ;;  %v614_v47 = vpop.permute.xlu0 %613 }
 0x12c   : > { %v876_v52 = vsel %vm865_vm6, %v863_v25, %v708_v5  ;;  %v849_v20 = vsel %vm839_vm4, %v836_v14, %v614_v47 }
 0x12f   : > { %v522_v4 = vpop.permute.xlu1 %521  ;;  %v779_v45 = vpop.permute.xlu0 %778 }
 0x130   : > { %v899_v34 = vsel %vm3767_vm8, %v886_v3, %v779_v45  ;;  %v825_v54 = vsel %vm813_vm2, %v812_v21, %v522_v4 }
 0x131   : > { %v1011_v23 = vrot.slane %v899_v34, %v3075_v41 }
 0x133   : > { %v1145_v62 = vcombine.low %v1004_v59, %v1011_v23  ;;  %v746_v1 = vpop.permute.xlu1 %745  ;;  %v668_v53 = vpop.permute.xlu0 %667 }
 0x134   : > { %v889_v2 = vsel %vm3768_vm7, %v876_v52, %v746_v1  ;;  %v862_v38 = vsel %vm852_vm5, %v849_v20, %v668_v53 }
 0x135   : > { %v1159_v40 = vrot.slane %v1145_v62, %v3075_v41 }
 0x137   : > { %v706_v43 = vpop.permute.xlu1 %705  ;;  %v570_v55 = vpop.permute.xlu0 %569  ;;  %v1160_v48 = vcombine.low %v1152_v37, %v1159_v40 }
 0x138   : > { %v875_v44 = vsel %vm865_vm6, %v862_v38, %v706_v43  ;;  %v838_v28 = vsel %vm826_vm3, %v825_v54, %v570_v55  ;;  %v3388_v38 = vadd.s32 4294967295, %v1478_v50 }
 0x139   : > { %2445 = vmatprep.mubr.msk.f32.mxu0 %vm3766_vm9, %v1160_v48 }
 0x13a   : > { %2446 = vmatmul.mubr.msk.f32.gmra.mrb[4].mxu0 %vm3766_vm9, %v1177_v17 }
 0x13b   : > { %v618_v0 = vpop.permute.xlu1 %617  ;;  %v785_v8 = vpop.permute.xlu0 %784 }
 0x13c   : > { %v902_v6 = vsel %vm3767_vm8, %v889_v2, %v785_v8  ;;  %v851_v12 = vsel %vm839_vm4, %v838_v28, %v618_v0 }
 0x13d   : > { %v1036_v57 = vcombine.high %v902_v6, %v902_v6  ;;  %v1043_v60 = vrot.slane %v902_v6, %v3075_v41  ;;  %v3379_v6 = vstv %s2369_s14 }
 0x13e   : > { %vm1481_vm12 = vcmp.ge.s32.totalorder %v3379_v6, 0  ;;  %vm1487_vm13 = vcmp.lt.s32.totalorder %v3379_v6, 8  ;;  %v1472_v50 = vadd.s32 2, %v3379_v6 }
 0x13f   : > { %v672_v5 = vpop.permute.xlu1 %671  ;;  %v744_v39 = vpop.permute.xlu0 %743  ;;  %v1050_v51 = vrot.slane %v1036_v57, %v3075_v41  ;;  %v1051_v56 = vcombine.high %v1043_v60, %v1043_v60 }
 0x140   : > { %v888_v7 = vsel %vm3768_vm7, %v875_v44, %v744_v39  ;;  %v864_v4 = vsel %vm852_vm5, %v851_v12, %v672_v5 }
 0x141   : > { %v1179_v47 = vcombine.low %v1051_v56, %v1050_v51  ;;  %v1052_v1 = vcombine.high %v1050_v51, %v1050_v51 }
 0x143   : > { %v710_v29 = vpop.permute.xlu1 %709  ;;  %v783_v18 = vpop.permute.xlu0 %782  ;;  %v1193_v23 = vrot.slane %v1179_v47, %v3075_v41 }
 0x144   : > { %v901_v36 = vsel %vm3767_vm8, %v888_v7, %v783_v18  ;;  %v877_v45 = vsel %vm865_vm6, %v864_v4, %v710_v29 }
 0x145   : > { %v1035_v3 = vrot.slane %v901_v36, %v3075_v41 }
 0x147   : > { %v1178_v46 = vcombine.low %v1035_v3, %v1043_v60  ;;  %v748_v34 = vpop.permute.xlu0 %747  ;;  %v787_v9 = vpop.permute.xlu1 %786  ;;  %v1471_v60 = vadd.s32 1, %v3379_v6 }
 0x148   : > { %v890_v59 = vsel %vm3768_vm7, %v877_v45, %v748_v34 }
 0x149   : > { %v1186_v13 = vrot.slane %v1178_v46, %v3075_v41  ;;  %v903_v62 = vsel %vm3767_vm8, %v890_v59, %v787_v9  ;;  %vm1482_vm10 = vcmp.ge.s32.totalorder %v1471_v60, 0  ;;  %vm1488_vm11 = vcmp.lt.s32.totalorder %v1471_v60, 8 }
 0x14a   : > { %v1059_v53 = vrot.slane %v903_v62, %v3075_v41  ;;  %vm3401_vm15 = vmand %vm1482_vm10, %vm1488_vm11  ;;  %vm1514_vm8 = vcmp.lt.s32.totalorder %v3388_v38, 8 }
 0x14b   : > { %v1194_v22 = vcombine.low %v1186_v13, %v1193_v23  ;;  %vm1518_vm10 = vmand %vm3401_vm15, %vm1514_vm8 }
 0x14c   : > { %v1195_v49 = vcombine.low %v1052_v1, %v1059_v53 }
 0x14d   : > { %2448 = vmatprep.mubr.msk.f32.mxu0 %vm3766_vm9, %v1194_v22 }
 0x14e   : > { %v1202_v37 = vrot.slane %v1195_v49, %v3075_v41 }
 0x150   : > { %2449 = vmatmul.mubr.msk.f32.gmra.mrb[6].mxu0 %vm3766_vm9, %v1202_v37  ;;  %vm1493_vm9 = vmand %vm1481_vm12, %vm1487_vm13  ;;  %vm1489_vm13 = vcmp.lt.s32.totalorder %v1472_v50, 8 }
 0x151   : > { %vm1501_vm7 = vmand %vm1493_vm9, %vm1499_vm14 }
 0x152   : > { %vm1516_vm11 = vmand %vm1493_vm9, %vm1514_vm8  ;;  %vm1483_vm9 = vcmp.ge.s32.totalorder %v1472_v50, 0 }
 0x153   : > { %vm1503_vm12 = vmand %vm3401_vm15, %vm1499_vm14 }
 0x154   : > { %vm3456_vm15 = vmand %vm1483_vm9, %vm1489_vm13 }
 0x155   : > { %vm3506_vm9 = vmand %vm3456_vm15, %vm1514_vm8 }
 0x1c8   : > { %v2441_v40 = vpop.f32.mrb[0].mxu0 }
 0x1c9   : > { %v1286_v26 = vpop.f32.mrb[1].mxu0  ;;  %v1292_v48 = vadd.f32 %v2441_v40, %v3371_v35 }
 0x1ca   : > { %v1287_v61 = vadd.f32 %v3371_v35, %v1286_v26 }
 0x1cb   : > { %v1326_v17 = vmax.f32 %v1292_v48, 0.0 }
 0x1cc   : > { %v1325_v43 = vmax.f32 %v1287_v61, 0.0 }
 0x1cd   : > { %v1358_v2 = vcombine.high %v1326_v17, %v1326_v17  ;;  %v1365_v0 = vrot.slane %v1326_v17, %v3075_v41 }
 0x1ce   : > { %v1341_v55 = vcombine.high %v1325_v43, %v1325_v43  ;;  %v1348_v25 = vrot.slane %v1325_v43, %v3075_v41 }
 0x1cf   : > { %v1372_v14 = vrot.slane %v1358_v2, %v3075_v41  ;;  %v1373_v5 = vcombine.high %v1365_v0, %v1365_v0  ;;  %v1574_v9 = vrot.slane %v1365_v0, %v3075_v41 }
 0x1d0   : > { %v1355_v58 = vrot.slane %v1341_v55, %v3075_v41  ;;  %v1356_v8 = vcombine.high %v1348_v25, %v1348_v25 }
 0x1d1   : > { %v1575_v7 = vcombine.low %v1373_v5, %v1372_v14  ;;  %v1374_v28 = vcombine.high %v1372_v14, %v1372_v14  ;;  %v1708_v40 = vsel %vm1516_vm11, %v1574_v9, 0.0  ;;  %v1730_v14 = vmax.f32 %v2926_v10, %v2770_v30 }
 0x1d2   : > { %v1357_v52 = vcombine.high %v1355_v58, %v1355_v58  ;;  %v1551_v39 = vcombine.low %v1348_v25, %v1356_v8  ;;  %v1889_v17 = vrot.slane %v1708_v40, 1  ;;  %v1914_v60 = vrot.slane %v1708_v40, 2 }
 0x1d3   : > { %v1583_v59 = vrot.slane %v1575_v7, %v3075_v41  ;;  %v3788_v30 = vmax.f32 %v2777_v32, %v2781_v33  ;;  %v1733_v7 = vmax.f32 %v2937_v15, %v2968_v24  ;;  %v3791_v32 = vld [vmem:[#allocation11_spill] sm:$0xff]  ;;  %v3792_v33 = vld [vmem:[#allocation17_spill] sm:$0xff]  ;;  %v3793_v15 = vld [vmem:[#allocation2_spill] sm:$0xff] }
 0x1d4   : > { %v1552_v57 = vcombine.low %v1355_v58, %v1357_v52  ;;  %v1559_v29 = vrot.slane %v1551_v39, %v3075_v41  ;;  %v3794_v24 = vld [vmem:[#allocation10_spill] sm:$0xff] }
 0x1d6   : > { %v1566_v56 = vrot.slane %v1552_v57, %v3075_v41 }
 0x1d8   : > { %v1567_v3 = vcombine.low %v1559_v29, %v1566_v56  ;;  %v1728_v29 = vmax.f32 %v3794_v24, %v3793_v15 }
 0x1da   : > { %v3423_v53 = vsel %vm1501_vm7, %v1567_v3, 0.0  ;;  %vm1912_vm7 = vcmask 1045504   ;;  %v3796_v3 = vld [vmem:[#allocation7_spill] sm:$0xff] }
 0x1db   : > { %v1888_v55 = vrot.slane %v3423_v53, 1  ;;  %v1913_v8 = vrot.slane %v3423_v53, 2 }
 0x1dd   : > { %v1890_v0 = vsel %vm480_vm0, %v1888_v55, %v1889_v17  ;;  %v1915_v5 = vsel %vm1912_vm7, %v1913_v8, %v1914_v60  ;;  %v3800_v55 = vld [vmem:[#allocation9_spill] sm:$0xff] }
 0x1f4   : > { %v2444_v21 = vpop.f32.mrb[2].mxu0 }
 0x1f5   : > { %v1302_v20 = vadd.f32 %v2444_v21, %v3371_v35  ;;  %v1296_v54 = vpop.f32.mrb[3].mxu0 }
 0x1f6   : > { %v1297_v51 = vadd.f32 %v3371_v35, %v1296_v54  ;;  %v1732_v54 = vmax.f32 %v3005_v42, %v2939_v16 }
 0x1f7   : > { %v3392_v44 = vmax.f32 %v1302_v20, 0.0  ;;  %v1731_v20 = vmax.f32 %v2902_v63, %v2950_v19  ;;  %v1734_v19 = vmax.f32 %v3792_v33, %v3791_v32 }
 0x1f8   : > { %v1327_v27 = vmax.f32 %v1297_v51, 0.0  ;;  %v2577_v51 = vld [vmem:[%s2713_s17 + $0xa0] sm:$0xff] }
 0x1f9   : > { %v1399_v18 = vrot.slane %v3392_v44, %v3075_v41  ;;  %v1392_v39 = vcombine.high %v3392_v44, %v3392_v44  ;;  %v1737_v10 = vmax.f32 %v3788_v30, %v2577_v51  ;;  %v1738_v44 = vmax.f32 %v1730_v14, %v2929_v11  ;;  %v3806_v30 = vld [vmem:[#allocation5_spill] sm:$0xff] }
 0x1fa   : > { %v1375_v36 = vcombine.high %v1327_v27, %v1327_v27  ;;  %v1382_v12 = vrot.slane %v1327_v27, %v3075_v41  ;;  %v1779_v27 = vld [vmem:[%s3746_s5] sm:$0xff] }
 0x1fb   : > { %v1407_v4 = vcombine.high %v1399_v18, %v1399_v18  ;;  %v1406_v42 = vrot.slane %v1392_v39, %v3075_v41  ;;  %2451 = vmatprep.subr.mxu1 %v1779_v27 }
 0x1fc   : > { %v1389_v45 = vrot.slane %v1375_v36, %v3075_v41  ;;  %v1390_v46 = vcombine.high %v1382_v12, %v1382_v12  ;;  %v1576_v34 = vcombine.low %v1374_v28, %v1382_v12  ;;  %v3795_v36 = vld [vmem:[#allocation15_spill] sm:$0xff]  ;;  %2452 = vmatpush3.msra.mxu1 %v1779_v27 }
 0x1fd   : > { %v1600_v23 = vcombine.low %v1399_v18, %v1407_v4  ;;  %v2578_v18 = vld [vmem:[%s2713_s17 + $0xb0] sm:$0xff]  ;;  %v1740_v12 = vmax.f32 %v1732_v54, %v3795_v36  ;;  %v1753_v4 = vmax.f32 %v1737_v10, %v3796_v3  ;;  %v1622_v54 = vrot.slane %v1406_v42, %v3075_v41  ;;  %v3807_v10 = vld [vmem:[#allocation3_spill] sm:$0xff] }
 0x1fe   : > { %v1391_v13 = vcombine.high %v1389_v45, %v1389_v45  ;;  %v1590_v62 = vrot.slane %v1576_v34, %v3075_v41  ;;  %v1598_v1 = vrot.slane %v1390_v46, %v3075_v41  ;;  %v1739_v28 = vmax.f32 %v1731_v20, %v2578_v18  ;;  %v3797_v34 = vld [vmem:[#allocation6_spill] sm:$0xff] }
 0x1ff   : > { %v1614_v26 = vrot.slane %v1600_v23, %v3075_v41  ;;  %v1754_v9 = vmax.f32 %v1738_v44, %v3797_v34  ;;  %v1770_v8 = vrot.slane %v1753_v4, 1  ;;  %v3808_v44 = vld [vmem:[#allocation4_spill] sm:$0xff] }
 0x200   : > { %v1599_v22 = vcombine.low %v1389_v45, %v1391_v13  ;;  %v1591_v49 = vcombine.low %v1583_v59, %v1590_v62  ;;  %v1710_v37 = vsel %vm1518_vm10, %v1598_v1, 0.0  ;;  %vm1505_vm10 = vmand %vm3456_vm15, %vm1499_vm14  ;;  %v3798_v59 = vld [vmem:[#allocation12_spill] sm:$0xff]  ;;  %v1473_v62 = vadd.s32 3, %v3379_v6 }
 0x201   : > { %v1892_v58 = vrot.slane %v1710_v37, 1  ;;  %v1917_v57 = vrot.slane %v1710_v37, 2  ;;  %v1741_v23 = vmax.f32 %v1733_v7, %v3798_v59  ;;  %v3799_v1 = vld [vmem:[#allocation16_spill] sm:$0xff]  ;;  %v1771_v50 = vrot.slane %v1754_v9, 1  ;;  %v2057_v9 = vld [vmem:[%s3744_s3] sm:$0xff]  ;;  %v2058_v59 = vld [vmem:[%s3744_s3 + $0x8] sm:$0xff] }
 0x202   : > { %v1607_v61 = vrot.slane %v1599_v22, %v3075_v41  ;;  %v3427_v43 = vsel %vm1503_vm12, %v1591_v49, 0.0  ;;  %v1742_v22 = vmax.f32 %v1734_v19, %v3799_v1  ;;  %v1408_v49 = vcombine.high %v1406_v42, %v1406_v42 }
 0x203   : > { %1938 = vrot.lane.b32.xlu0 %v3427_v43, %s2620_s18  ;;  %v1891_v48 = vrot.slane %v3427_v43, 1  ;;  %v1916_v52 = vrot.slane %v3427_v43, 2  ;;  %vm1484_vm11 = vcmp.ge.s32.totalorder %v1473_v62, 0  ;;  %vm1490_vm12 = vcmp.lt.s32.totalorder %v1473_v62, 8 }
 0x204   : > { %v1615_v25 = vcombine.low %v1607_v61, %v1614_v26  ;;  %v2579_v26 = vld [vmem:[%s2713_s17 + $0x98] sm:$0x7]  ;;  %vm3516_vm13 = vmand %vm1484_vm11, %vm1490_vm12 }
 0x205   : > { %v1893_v2 = vsel %vm480_vm0, %v1891_v48, %v1892_v58  ;;  %v1918_v21 = vsel %vm1912_vm7, %v1916_v52, %v1917_v57  ;;  %v1736_v61 = vmax.f32 %v1728_v29, %v2579_v26  ;;  %v1755_v48 = vmax.f32 %v1739_v28, %v3800_v55  ;;  %v3801_v58 = vld [vmem:[#allocation8_spill] sm:$0xff]  ;;  %v3802_v57 = vld [vmem:[#allocation14_spill] sm:$0xff]  ;;  %vm1507_vm15 = vmand %vm3516_vm13, %vm1499_vm14 }
 0x206   : > { %1902 = vrot.lane.b32.xlu1 %v1893_v2, %s2621_s19  ;;  %v3479_v46 = vsel %vm1505_vm10, %v1615_v25, 0.0  ;;  %v1756_v17 = vmax.f32 %v1740_v12, %v3801_v58  ;;  %v1757_v60 = vmax.f32 %v1741_v23, %v3802_v57  ;;  %v1712_v28 = vsel %vm3506_vm9, %v1622_v54, 0.0  ;;  %v2060_v26 = vld [vmem:[%s3744_s3 + $0x18] sm:$0xff] }
 0x207   : > { %1900 = vrot.lane.b32.xlu0 %v1890_v0, %s2621_s19  ;;  %v1752_v7 = vmax.f32 %v1736_v61, %v3808_v44  ;;  %v1894_v36 = vrot.slane %v3479_v46, 1  ;;  %v1474_v12 = vadd.s32 4, %v3379_v6  ;;  %v2499_v23 = vpack.c.bf16 %v2058_v59, %v2057_v9 }
 0x208   : > { %v1774_v20 = vrot.slane %v1756_v17, 1  ;;  %v1776_v15 = vrot.slane %v1757_v60, 1  ;;  %v1895_v62 = vrot.slane %v1712_v28, 1  ;;  %v2061_v60 = vld [vmem:[%s3744_s3 + $0x20] sm:$0xff] }
 0x209   : > { %vm1485_vm10 = vcmp.ge.s32.totalorder %v1474_v12, 0  ;;  %vm1491_vm11 = vcmp.lt.s32.totalorder %v1474_v12, 8  ;;  %2500 = vmatprep.subr.bf16.mxu1 %v2499_v23 }
 0x20a   : > { %1927 = vrot.lane.b32.xlu1 %v1918_v21, %s2623_s21  ;;  %v1896_v1 = vsel %vm480_vm0, %v1894_v36, %v1895_v62  ;;  %vm3580_vm12 = vmand %vm1485_vm10, %vm1491_vm11 }
 0x20b   : > { %1925 = vrot.lane.b32.xlu0 %v1915_v5, %s2623_s21  ;;  %vm1509_vm9 = vmand %vm3580_vm12, %vm1499_vm14 }
 0x20d   : > { %v2447_v56 = vpop.f32.mrb[4].mxu0 }
 0x20e   : > { %v1312_v63 = vadd.f32 %v2447_v56, %v3371_v35  ;;  %1969 = vrot.lane.b32.xlu1 %v1918_v21, %s2624_s22  ;;  %v1306_v16 = vpop.f32.mrb[5].mxu0  ;;  %v3803_v21 = vld [vmem:[#allocation13_spill] sm:$0xff]  ;;  %v1751_v56 = vmax.f32 %v3807_v10, %v3806_v30  ;;  %v2063_v10 = vld [vmem:[%s3744_s3 + $0x30] sm:$0xff] }
 0x20f   : > { %v1307_v11 = vadd.f32 %v3371_v35, %v1306_v16  ;;  %1954 = vrot.lane.b32.xlu0 %v1893_v2, %s2622_s20  ;;  %v1758_v14 = vmax.f32 %v1742_v22, %v3803_v21  ;;  %v1919_v22 = vrot.slane %v3479_v46, 2  ;;  %v2062_v21 = vld [vmem:[%s3744_s3 + $0x28] sm:$0xff] }
 0x210   : > { %v1330_v47 = vmax.f32 %v1312_v63, 0.0  ;;  %v1773_v63 = vrot.slane %v1755_v48, 1  ;;  %v1767_v42 = vrot.slane %v1751_v56, 1  ;;  %v1920_v48 = vrot.slane %v1712_v28, 2  ;;  %v2064_v56 = vld [vmem:[%s3744_s3 + $0x38] sm:$0xff] }
 0x211   : > { %v1329_v45 = vmax.f32 %v1307_v11, 0.0  ;;  %v1768_v11 = vrot.slane %v1752_v7, 1  ;;  %v1777_v24 = vrot.slane %v1758_v14, 1  ;;  %v2511_v44 = vpack.c.bf16 %v2064_v56, %v2063_v10 }
 0x212   : > { %v1426_v13 = vcombine.high %v1330_v47, %v1330_v47  ;;  %1940 = vrot.lane.b32.xlu1 %v3479_v46, %s2620_s18  ;;  %v1433_v5 = vrot.slane %v1330_v47, %v3075_v41  ;;  %v1775_v34 = vsel %vm480_vm0, %v1773_v63, %v1774_v20 }
 0x213   : > { %v1409_v37 = vcombine.high %v1329_v45, %v1329_v45  ;;  %v1416_v40 = vrot.slane %v1329_v45, %v3075_v41  ;;  %v1769_v47 = vsel %vm480_vm0, %v1767_v42, %v1768_v11  ;;  %v1772_v45 = vsel %vm480_vm0, %v1770_v8, %v1771_v50  ;;  %2188 = vst.msk [vmem:[%s3533_s28 + $0x10] sm:$0xff] %vm800_vm1, %v1775_v34 }
 0x214   : > { %v1440_v25 = vrot.slane %v1426_v13, %v3075_v41  ;;  %v1441_v29 = vcombine.high %v1433_v5, %v1433_v5  ;;  %2453 = vmatprep.mubr.msk.f32.mxu1 %vm800_vm1, %v1769_v47  ;;  %2186 = vst.msk [vmem:[%s3533_s28] sm:$0xff] %vm800_vm1, %v1769_v47  ;;  %2187 = vst.msk [vmem:[%s3533_s28 + $0x8] sm:$0xff] %vm800_vm1, %v1772_v45  ;;  %v1921_v50 = vsel %vm1912_vm7, %v1919_v22, %v1920_v48 }
 0x215   : > { %v3493_v52 = vrot.slane %v1409_v37, %v3075_v41  ;;  %v1424_v2 = vcombine.high %v1416_v40, %v1416_v40  ;;  %v1623_v0 = vcombine.low %v1408_v49, %v1416_v40  ;;  %2454 = vmatmul.mubr.msk.f32.vlgmr.msra.gmra.mrb[0].mxu1 %vm800_vm1, %v1772_v45  ;;  %v1778_v37 = vsel %vm480_vm0, %v1776_v15, %v1777_v24  ;;  %v2059_v40 = vld [vmem:[%s3744_s3 + $0x10] sm:$0xff]  ;;  %v2065_v24 = vld [vmem:[%s3744_s3 + $0x40] sm:$0xff] }
 0x216   : > { %1982 = vrot.lane.b32.xlu1 %v3479_v46, %s2625_s23  ;;  %v1442_v16 = vcombine.high %v1440_v25, %v1440_v25  ;;  %v1647_v13 = vcombine.low %v1433_v5, %v1441_v29  ;;  %2456 = vmatprep.mubr.msk.f32.mxu1 %vm800_vm1, %v1775_v34  ;;  %2189 = vst.msk [vmem:[%s3533_s28 + $0x18] sm:$0xff] %vm800_vm1, %v1778_v37 }
 0x217   : > { %v1624_v39 = vcombine.low %v1424_v2, %v3493_v52  ;;  %v1631_v32 = vrot.slane %v1623_v0, %v3075_v41  ;;  %2502 = vmatpush3.bf16.msra.mxu1 %v2499_v23  ;;  %v2503_v17 = vpack.c.bf16 %v2060_v26, %v2059_v40 }
 0x218   : > { %v1648_v3 = vcombine.low %v1440_v25, %v1442_v16  ;;  %v1655_v61 = vrot.slane %v1647_v13, %v3075_v41  ;;  %v1425_v25 = vcombine.high %v3493_v52, %v3493_v52  ;;  %v2507_v52 = vpack.c.bf16 %v2062_v21, %v2061_v60 }
 0x219   : > { %v1638_v33 = vrot.slane %v1624_v39, %v3075_v41  ;;  %2457 = vmatmul.mubr.msk.f32.gmra.mrb[2].mxu1 %vm800_vm1, %v1778_v37  ;;  %2504 = vmatprep.subr.bf16.mxu1 %v2503_v17 }
 0x21a   : > { %v1662_v49 = vrot.slane %v1648_v3, %v3075_v41  ;;  %v1646_v39 = vrot.slane %v1425_v25, %v3075_v41 }
 0x21b   : > { %v1639_v18 = vcombine.low %v1631_v32, %v1638_v33  ;;  %2506 = vmatpush3.bf16.msra.mxu1 %v2503_v17 }
 0x21c   : > { %v1663_v57 = vcombine.low %v1655_v61, %v1662_v49  ;;  %2508 = vmatprep.subr.bf16.mxu1 %v2507_v52 }
 0x21d   : > { %v3540_v4 = vsel %vm1507_vm15, %v1639_v18, 0.0  ;;  %vm3609_vm15 = vmand %vm3516_vm13, %vm1514_vm8 }
 0x21e   : > { %1984 = vrot.lane.b32.xlu0 %v3540_v4, %s2625_s23  ;;  %1942 = vrot.lane.b32.xlu1 %v3540_v4, %s2620_s18  ;;  %vm1524_vm13 = vmand %vm3580_vm12, %vm1514_vm8  ;;  %v1714_v33 = vsel %vm3609_vm15, %v1646_v39, 0.0  ;;  %v1897_v11 = vrot.slane %v3540_v4, 1  ;;  %v1922_v59 = vrot.slane %v3540_v4, 2 }
 0x21f   : > { %2510 = vmatpush3.bf16.msra.mxu1 %v2507_v52  ;;  %v1898_v3 = vrot.slane %v1714_v33, 1  ;;  %v1923_v38 = vrot.slane %v1714_v33, 2 }
 0x220   : > { %2512 = vmatprep.subr.bf16.mxu1 %v2511_v44 }
 0x221   : > { %v1899_v9 = vsel %vm480_vm0, %v1897_v11, %v1898_v3  ;;  %v1924_v22 = vsel %vm1912_vm7, %v1922_v59, %v1923_v38 }
 0x222   : > { %1956 = vrot.lane.b32.xlu0 %v1896_v1, %s2622_s20  ;;  %1904 = vrot.lane.b32.xlu1 %v1896_v1, %s2621_s19 }
 0x223   : > { %v2450_v55 = vpop.f32.mrb[6].mxu0  ;;  %2514 = vmatpush3.bf16.msra.mxu1 %v2511_v44 }
 0x224   : > { %v1322_v2 = vadd.f32 %v2450_v55, %v3371_v35  ;;  %v1316_v0 = vpop.f32.mrb[7].mxu0  ;;  %2475 = vmatprep.subr.mxu1 %v2065_v24 }
 0x225   : > { %v1317_v8 = vadd.f32 %v3371_v35, %v1316_v0  ;;  %v1475_v35 = vadd.s32 5, %v3379_v6  ;;  %v1715_v6 = vsel %vm1509_vm9, %v1663_v57, 0.0 }
 0x226   : > { %v1332_v14 = vmax.f32 %v1322_v2, 0.0  ;;  %1971 = vrot.lane.b32.xlu0 %v1921_v50, %s2624_s22  ;;  %1929 = vrot.lane.b32.xlu1 %v1921_v50, %s2623_s21  ;;  %v1951_v29 = vrot.slane %v1715_v6, 1  ;;  %v1966_v18 = vrot.slane %v1715_v6, 2 }
 0x227   : > { %v1331_v5 = vmax.f32 %v1317_v8, 0.0  ;;  %vm1486_vm10 = vcmp.ge.s32.totalorder %v1475_v35, 0  ;;  %vm1492_vm11 = vcmp.lt.s32.totalorder %v1475_v35, 8  ;;  %2476 = vmatpush3.msra.mxu1 %v2065_v24 }
 0x228   : > { %v1466_v20 = vrot.slane %v1332_v14, %v3075_v41  ;;  %vm3631_vm12 = vmand %vm1486_vm10, %vm1492_vm11 }
 0x229   : > { %v1443_v51 = vcombine.high %v1331_v5, %v1331_v5  ;;  %v1450_v30 = vrot.slane %v1331_v5, %v3075_v41  ;;  %vm1526_vm9 = vmand %vm3631_vm12, %vm1514_vm8 }
 0x22a   : > { %1944 = vrot.lane.b32.xlu0 %v1715_v6, %s2620_s18  ;;  %1998 = vrot.lane.b32.xlu1 %v1896_v1, %s2626_s24  ;;  %v1467_v7 = vcombine.high %v1466_v20, %v1466_v20  ;;  %vm1511_vm8 = vmand %vm3631_vm12, %vm1499_vm14  ;;  %vm3818_vm14 = vcmask 523264  }
 0x22b   : > { %v1457_v63 = vrot.slane %v1443_v51, %v3075_v41  ;;  %v1458_v16 = vcombine.high %v1450_v30, %v1450_v30  ;;  %v1670_v32 = vrot.slane %v1450_v30, %v3075_v41 }
 0x22c   : > { %v1694_v12 = vrot.slane %v1467_v7, %v3075_v41 }
 0x22d   : > { %v1459_v19 = vcombine.high %v1457_v63, %v1457_v63  ;;  %v1671_v27 = vcombine.low %v1458_v16, %v1457_v63  ;;  %v1716_v42 = vsel %vm1524_vm13, %v1670_v32, 0.0  ;;  %vm3821_vm13 = vmmov %vm3818_vm14 }
 0x22e   : > { %1986 = vrot.lane.b32.xlu0 %v1715_v6, %s2625_s23  ;;  %2013 = vrot.lane.b32.xlu1 %v1921_v50, %s2627_s25  ;;  %v1967_v28 = vrot.slane %v1716_v42, 2  ;;  %v1952_v36 = vrot.slane %v1716_v42, 1  ;;  %v1718_v1 = vsel %vm1526_vm9, %v1694_v12, 0.0  ;;  %vm3825_vm12 = vmmov %vm3821_vm13 }
 0x22f   : > { %v1672_v47 = vcombine.low %v1459_v19, %v1466_v20  ;;  %v1679_v23 = vrot.slane %v1671_v27, %v3075_v41  ;;  %v1996_v40 = vrot.slane %v1718_v1, 1  ;;  %v2011_v26 = vrot.slane %v1718_v1, 2 }
 0x230   : > { %v1968_v45 = vsel %vm1912_vm7, %v1966_v18, %v1967_v28  ;;  %v1953_v34 = vsel %vm480_vm0, %v1951_v29, %v1952_v36 }
 0x231   : > { %v1686_v13 = vrot.slane %v1672_v47, %v3075_v41 }
 0x232   : > { %1958 = vrot.lane.b32.xlu1 %v1899_v9, %s2622_s20  ;;  %1906 = vrot.lane.b32.xlu0 %v1899_v9, %s2621_s19 }
 0x233   : > { %v1687_v62 = vcombine.low %v1679_v23, %v1686_v13 }
 0x235   : > { %v1717_v49 = vsel %vm1511_vm8, %v1687_v62, 0.0 }
 0x236   : > { %1973 = vrot.lane.b32.xlu1 %v1924_v22, %s2624_s22  ;;  %1931 = vrot.lane.b32.xlu0 %v1924_v22, %s2623_s21  ;;  %v1995_v41 = vrot.slane %v1717_v49, 1  ;;  %v2010_v37 = vrot.slane %v1717_v49, 2 }
 0x238   : > { %v1997_v31 = vsel %vm480_vm0, %v1995_v41, %v1996_v40  ;;  %v2012_v61 = vsel %vm1912_vm7, %v2010_v37, %v2011_v26  ;;  %vm3817_vm0 = vcmask 457728   ;;  %vm3819_vm7 = vcmask 588800  }
 0x239   : > { %vm3820_vm15 = vmmov %vm3817_vm0 }
 0x23a   : > { %2000 = vrot.lane.b32.xlu0 %v1899_v9, %s2626_s24  ;;  %1975 = vrot.lane.b32.xlu1 %v1968_v45, %s2624_s22  ;;  %vm3822_vm10 = vmmov %vm3819_vm7 }
 0x23b   : > { %vm3823_vm11 = vmmov %vm3817_vm0 }
 0x23c   : > { %vm3827_vm9 = vmmov %vm3819_vm7 }
 0x23e   : > { %2015 = vrot.lane.b32.xlu0 %v1924_v22, %s2627_s25  ;;  %1988 = vrot.lane.b32.xlu1 %v1717_v49, %s2625_s23 }
 0x242   : > { %1960 = vrot.lane.b32.xlu0 %v1953_v34, %s2622_s20  ;;  %2004 = vrot.lane.b32.xlu1 %v1997_v31, %s2626_s24 }
 0x246   : > { %2002 = vrot.lane.b32.xlu0 %v1953_v34, %s2626_s24  ;;  %2019 = vrot.lane.b32.xlu1 %v2012_v61, %s2627_s25 }
 0x24a   : > { %2017 = vrot.lane.b32.xlu0 %v1968_v45, %s2627_s25  ;;  %s353_s25 = scalar_lea.vmem %s3748_s7, %s2384_s15 }
 0x275   : > { %v1939_v48 = vpop.permute.xlu0 %1938 }
 0x278   : > { %v1903_v55 = vpop.permute.xlu1 %1902 }
 0x279   : > { %v1901_v17 = vpop.permute.xlu0 %1900  ;;  %v2026_v32 = vsel %vm800_vm1, %v3427_v43, %v1903_v55  ;;  %v2372_v55 = vld [vmem:[%s3747_s6] ss:$0 sm:$0xff] }
 0x27a   : > { %v2025_v35 = vsel %vm800_vm1, %v3423_v53, %v1901_v17 }
 0x27c   : > { %v1928_v58 = vpop.permute.xlu1 %1927 }
 0x27d   : > { %v1926_v2 = vpop.permute.xlu0 %1925  ;;  %v2030_v27 = vsel %vm813_vm2, %v2026_v32, %v1928_v58  ;;  %v2377_v58 = vld [vmem:[%s3745_s4] ss:$0 sm:$0xff] }
 0x27e   : > { %v2029_v52 = vsel %vm813_vm2, %v2025_v35, %v1926_v2 }
 0x27f   : > { %v2033_v20 = vsel %vm826_vm3, %v2029_v52, %v1939_v48 }
 0x280   : > { %v1970_v25 = vpop.permute.xlu1 %1969 }
 0x281   : > { %v1955_v8 = vpop.permute.xlu0 %1954 }
 0x282   : > { %v2037_v54 = vsel %vm839_vm4, %v2033_v20, %v1955_v8 }
 0x283   : > { %v2041_v6 = vsel %vm852_vm5, %v2037_v54, %v1970_v25 }
 0x284   : > { %v1941_v0 = vpop.permute.xlu1 %1940 }
 0x285   : > { %v2034_v42 = vsel %vm826_vm3, %v2030_v27, %v1941_v0 }
 0x288   : > { %v1983_v50 = vpop.permute.xlu1 %1982 }
 0x289   : > { %v2045_v10 = vsel %vm865_vm6, %v2041_v6, %v1983_v50 }
 0x290   : > { %v1943_v57 = vpop.permute.xlu1 %1942  ;;  %v1985_v60 = vpop.permute.xlu0 %1984 }
 0x294   : > { %v1905_v21 = vpop.permute.xlu1 %1904  ;;  %v1957_v14 = vpop.permute.xlu0 %1956 }
 0x295   : > { %v2038_v11 = vsel %vm839_vm4, %v2034_v42, %v1957_v14  ;;  %v2027_v45 = vsel %vm800_vm1, %v3479_v46, %v1905_v21 }
 0x298   : > { %v1930_v5 = vpop.permute.xlu1 %1929  ;;  %v1972_v39 = vpop.permute.xlu0 %1971 }
 0x299   : > { %v2042_v15 = vsel %vm852_vm5, %v2038_v11, %v1972_v39  ;;  %v2031_v34 = vsel %vm813_vm2, %v2027_v45, %v1930_v5 }
 0x29a   : > { %v2046_v18 = vsel %vm865_vm6, %v2042_v15, %v1985_v60  ;;  %v2035_v13 = vsel %vm826_vm3, %v2031_v34, %v1943_v57  ;;  %v2521_v60 = vadd.f32 %v2377_v58, %v2372_v55 }
 0x29c   : > { %v1999_v51 = vpop.permute.xlu1 %1998  ;;  %v1945_v30 = vpop.permute.xlu0 %1944 }
 0x29d   : > { %v2049_v56 = vsel %vm3817_vm0, %v2045_v10, %v1999_v51 }
 0x2a0   : > { %v2014_v44 = vpop.permute.xlu1 %2013  ;;  %v1987_v7 = vpop.permute.xlu0 %1986 }
 0x2a1   : > { %v2053_v53 = vsel %vm3818_vm14, %v2049_v56, %v2014_v44 }
 0x2a2   : > { %2477 = vmatprep.mubr.msk.f32.mxu1 %vm3819_vm7, %v2053_v53 }
 0x2a4   : > { %v1959_v63 = vpop.permute.xlu1 %1958  ;;  %v1907_v16 = vpop.permute.xlu0 %1906 }
 0x2a5   : > { %v2028_v28 = vsel %vm800_vm1, %v3540_v4, %v1907_v16  ;;  %v2039_v62 = vsel %vm839_vm4, %v2035_v13, %v1959_v63 }
 0x2a8   : > { %v1974_v33 = vpop.permute.xlu1 %1973  ;;  %v1932_v19 = vpop.permute.xlu0 %1931 }
 0x2a9   : > { %v2032_v47 = vsel %vm813_vm2, %v2028_v28, %v1932_v19  ;;  %v2043_v1 = vsel %vm852_vm5, %v2039_v62, %v1974_v33  ;;  %vm3824_vm2 = vmmov %vm3817_vm0 }
 0x2aa   : > { %v2036_v9 = vsel %vm826_vm3, %v2032_v47, %v1945_v30  ;;  %v2047_v37 = vsel %vm865_vm6, %v2043_v1, %v1987_v7  ;;  %vm3826_vm3 = vmmov %vm3825_vm12 }
 0x2ac   : > { %v1976_v24 = vpop.permute.xlu1 %1975  ;;  %v2001_v29 = vpop.permute.xlu0 %2000 }
 0x2ad   : > { %v2050_v36 = vsel %vm3820_vm15, %v2046_v18, %v2001_v29 }
 0x2b0   : > { %v1989_v43 = vpop.permute.xlu1 %1988  ;;  %v2016_v12 = vpop.permute.xlu0 %2015 }
 0x2b1   : > { %v2054_v3 = vsel %vm3821_vm13, %v2050_v36, %v2016_v12 }
 0x2b2   : > { %2478 = vmatmul.mubr.msk.f32.vlgmr.msra.gmra.mrb[0].mxu1 %vm3822_vm10, %v2054_v3 }
 0x2b4   : > { %v1961_v59 = vpop.permute.xlu0 %1960  ;;  %v2005_v23 = vpop.permute.xlu1 %2004 }
 0x2b5   : > { %v2040_v4 = vsel %vm839_vm4, %v2036_v9, %v1961_v59  ;;  %vm3828_vm4 = vmmov %vm3819_vm7 }
 0x2b6   : > { %v2044_v38 = vsel %vm852_vm5, %v2040_v4, %v1976_v24 }
 0x2b7   : > { %v2048_v46 = vsel %vm865_vm6, %v2044_v38, %v1989_v43 }
 0x2b8   : > { %v2003_v22 = vpop.permute.xlu0 %2002  ;;  %v2020_v49 = vpop.permute.xlu1 %2019  ;;  %v2052_v41 = vsel %vm3823_vm11, %v2048_v46, %v2005_v23 }
 0x2b9   : > { %v2051_v40 = vsel %vm3824_vm2, %v2047_v37, %v2003_v22  ;;  %v2056_v61 = vsel %vm3826_vm3, %v2052_v41, %v2020_v49 }
 0x2bc   : > { %v2018_v26 = vpop.permute.xlu0 %2017 }
 0x2bd   : > { %v2055_v31 = vsel %vm3825_vm12, %v2051_v40, %v2018_v26 }
 0x2be   : > { %2480 = vmatprep.mubr.msk.f32.mxu1 %vm3827_vm9, %v2055_v31 }
 0x2bf   : > { %2481 = vmatmul.mubr.msk.f32.gmra.mrb[2].mxu1 %vm3828_vm4, %v2056_v61 }
 0x385   : > { %v2479_v48 = vpop.f32.mrb[0].mxu1 }
 0x386   : > { %v2515_v17 = vadd.f32 %v2479_v48, %v2372_v55  ;;  %v2151_v25 = vpop.f32.mrb[1].mxu1 }
 0x387   : > { %v2517_v2 = vadd.f32 %v2372_v55, %v2151_v25 }
 0x388   : > { %v2516_v0 = vadd.f32 %v2515_v17, %v2377_v58 }
 0x389   : > { %v2518_v8 = vadd.f32 %v2517_v2, %v2377_v58 }
 0x38a   : > { %v2175_v50 = vmax.f32 %v2516_v0, 0.0 }
 0x38b   : > { %v2174_v57 = vmax.f32 %v2518_v8, 0.0 }
 0x38c   : > { %2179 = vst.msk [vmem:[%s353_s25 + $0x8] sm:$0xff] %vm800_vm1, %v2175_v50 }
 0x38d   : > { %2178 = vst.msk [vmem:[%s353_s25] sm:$0xff] %vm800_vm1, %v2174_v57 }
 0x392   : > { %v2482_v21 = vpop.f32.mrb[2].mxu1 }
 0x393   : > { %v2520_v14 = vadd.f32 %v2521_v60, %v2482_v21  ;;  %v2161_v35 = vpop.f32.mrb[3].mxu1 }
 0x394   : > { %v2522_v52 = vadd.f32 %v2521_v60, %v2161_v35 }
 0x395   : > { %v2177_v5 = vmax.f32 %v2520_v14, 0.0 }
 0x396   : > { %v2176_v39 = vmax.f32 %v2522_v52, 0.0 }
 0x397   : > { %2181 = vst.msk [vmem:[%s353_s25 + $0x18] sm:$0xff] %vm800_vm1, %v2177_v5 }
 0x398   : > { %2180 = vst.msk [vmem:[%s353_s25 + $0x10] sm:$0xff] %vm800_vm1, %v2176_v39 }
 0x399 PF: > { %s19_s9 = sadd.s32 1, %s2618_s9   ;;  %s3829_s27 = smov %s2610_s29 }
 0x39a   : > { %p16_p6 = scmp.ge.s32.totalorder %s19_s9, 6   ;;  %s3830_s28 = smov %s2614_s30 }
 0x39b   : > { %s3831_s29 = smov %s3834_s10  ;;  %s3832_s30 = smov %s3838_s11 }
 0x39c   :  { %18 = sbr.rel (!%p16_p6) target bundleno = 3 (0x3), region = 93 }

</bundles_post_ra>
